<compile_context>
chip_gen: v6e
topology: v6e:2x2x1
jax: 0.10.0
libtpu: 0.0.40
codegen_flags: <defaults>
</compile_context>

<pallas_src>
import functools

import jax
import jax.numpy as jnp
from jax import lax
from jax.experimental import pallas as pl
from jax.experimental.pallas import tpu as pltpu


_EPS = 1e-5


# --------------------------------------------------------------------------- #
# Kernel bodies
# --------------------------------------------------------------------------- #
def _ff_residual(x_ref, w1_ref, w2_ref, compute_dtype):
    """relu(x @ W1) @ W2 + x in f32.  w1_ref: (D, F), w2_ref: (F, D)."""
    bt, nt, d = x_ref.shape
    x = x_ref[...]                                    # input dtype
    x2d = x.reshape(bt * nt, d)                       # free view (nt sublane-aligned)
    xc = x2d.astype(compute_dtype)                    # bf16 operands for the MXU
    h = jnp.dot(xc, w1_ref[...], preferred_element_type=jnp.float32)   # (M, F)
    h = jnp.maximum(h, 0.0).astype(compute_dtype)
    y2d = jnp.dot(h, w2_ref[...], preferred_element_type=jnp.float32)  # (M, D)
    return y2d.reshape(bt, nt, d) + x.astype(jnp.float32)


def _normalize(y, y_sum, n_valid, gamma_ref, beta_ref, out_dtype):
    """Instance norm over axis 1 (two-pass stats, biased variance, f32)."""
    _, n_pad, d = y.shape
    inv_n = jnp.float32(1.0 / n_valid)
    mean = y_sum * inv_n                              # (bt, 1, d)
    cen = y - mean
    if n_pad != n_valid:
        # Zero-padded sequence rows are excluded from the centered sum of squares.
        row = lax.broadcasted_iota(jnp.int32, (1, n_pad, 1), 1)
        cen_m = jnp.where(row < n_valid, cen, 0.0)
    else:
        cen_m = cen
    var = jnp.sum(cen_m * cen_m, axis=1, keepdims=True) * inv_n
    rstd = lax.rsqrt(var + jnp.float32(_EPS))         # EUP
    gamma = gamma_ref[...].astype(jnp.float32).reshape(1, 1, d)
    beta = beta_ref[...].astype(jnp.float32).reshape(1, 1, d)
    return (cen * rstd * gamma + beta).astype(out_dtype)


def _ffnorm_kernel_fused(x_ref, w1_ref, w2_ref, g_ref, b_ref, o_ref, *,
                         n_valid, compute_dtype):
    """Whole sequence per grid step: FF + residual + instance norm, fused."""
    y = _ff_residual(x_ref, w1_ref, w2_ref, compute_dtype)
    y_sum = jnp.sum(y, axis=1, keepdims=True)
    o_ref[...] = _normalize(y, y_sum, n_valid, g_ref, b_ref, o_ref.dtype)


def _ffnorm_kernel_ntiled(x_ref, w1_ref, w2_ref, g_ref, b_ref, o_ref, y_scr, *,
                          n_valid, compute_dtype):
    """Sequence-tiled path: stage f32 residual in VMEM, normalize on last tile."""
    ni = pl.program_id(1)
    nt = x_ref.shape[1]
    y = _ff_residual(x_ref, w1_ref, w2_ref, compute_dtype)
    start = pl.multiple_of(ni * nt, nt)
    y_scr[:, pl.ds(start, nt), :] = y

    @pl.when(ni == pl.num_programs(1) - 1)
    def _():
        y_full = y_scr[...]
        y_sum = jnp.sum(y_full, axis=1, keepdims=True)
        o_ref[...] = _normalize(y_full, y_sum, n_valid, g_ref, b_ref, o_ref.dtype)


# --------------------------------------------------------------------------- #
# Tiling / VMEM budgeting
# --------------------------------------------------------------------------- #
def _round_up(v, m):
    return -(-v // m) * m


def _vmem_capacity_bytes():
    try:
        info = pltpu.get_tpu_info()
        cap = int(getattr(info, "vmem_capacity_bytes", 0) or 0)
        if cap > 0:
            return cap
    except Exception:
        pass
    return 64 * 1024 * 1024      # conservative fallback (v7x per-TensorCore VMEM)


def _vmem_budgets():
    cap = _vmem_capacity_bytes()
    # ~48 MiB scoped limit on v7x (64 MiB/TC), ~96 MiB on v5e/v6e (128 MiB).
    vmem_limit = min(cap * 3 // 4, 96 * 1024 * 1024)
    tile_budget = int(vmem_limit * 0.8)               # headroom for compiler scratch
    return tile_budget, vmem_limit


def _working_set_bytes(bt, nt, n_pad, n_tiles, d_pad, f_pad, in_isz, out_isz, w_isz):
    rows = bt * nt
    resident = 2 * d_pad * f_pad * w_isz              # W1 + W2 (resident, single-buffered)
    resident += 2 * bt * n_pad * d_pad * out_isz      # output block (double-buffered)
    if n_tiles > 1:
        resident += bt * n_pad * d_pad * 4            # f32 residual scratch
    per_step = (2 * bt * nt * d_pad * in_isz          # x block (double-buffered)
                + rows * f_pad * (4 + w_isz)          # h (f32) + bf16 copy for GEMM2
                + 3 * rows * d_pad * 4)               # f32 residual tile + norm temps
    return resident + per_step


def _select_tiles(B, N, d_pad, f_pad, in_isz, out_isz, w_isz, sub, budget, seq_tile):
    def fits(bt, nt, n_pad):
        return _working_set_bytes(bt, nt, n_pad, n_pad // nt, d_pad, f_pad,
                                  in_isz, out_isz, w_isz) <= budget

    bt_cap = B if B < 2 else B // 2       # keep >= 2 batch grid steps (v7x megacore)
    bt_divs = [d for d in range(1, bt_cap + 1) if B % d == 0]

    if seq_tile is not None:              # explicit sequence tiling (tests / huge N)
        nt = min(_round_up(int(seq_tile), sub), _round_up(N, sub))
        n_pad = _round_up(N, nt)
        fitting = [d for d in bt_divs if fits(d, nt, n_pad)]
        return (max(fitting) if fitting else 1), nt, n_pad

    # Preferred: whole sequence per step (single-pass norm, biggest GEMM M-dim).
    n_pad = _round_up(N, sub)
    fitting = [d for d in bt_divs if fits(d, n_pad, n_pad)]
    if fitting:
        capped = [d for d in fitting if d * n_pad <= 2048]     # rows soft-cap
        return (max(capped) if capped else min(fitting)), n_pad, n_pad

    # Fallback: bt = 1 and tile the sequence (f32 residual staged in VMEM scratch).
    nt = n_pad
    while nt > sub:
        nt = _round_up(nt // 2, sub)
        n_pad2 = _round_up(N, nt)
        if fits(1, nt, n_pad2):
            return 1, nt, n_pad2
    raise ValueError(
        "FFNormSubLayer: even the smallest sequence tile does not fit the VMEM "
        "budget; sequence too long for a single-kernel instance norm.")
    # TODO(synk): two-pass (stats kernel + normalize kernel) path for extreme N.


# --------------------------------------------------------------------------- #
# Wrapper
# --------------------------------------------------------------------------- #
def ffnorm_sublayer(x, w1, w2, gamma, beta, *, use_bf16_matmul=True, seq_tile=None):
    """x: [B, N, D]; w1: [F, D]; w2: [D, F]; gamma/beta: [D]  (PyTorch shapes)."""
    B, N, D = x.shape
    F = w1.shape[0]
    out_dtype = x.dtype
    in_isz = jnp.dtype(x.dtype).itemsize
    out_isz = in_isz

    if use_bf16_matmul or x.dtype == jnp.bfloat16:
        compute_dtype = jnp.bfloat16
    else:
        compute_dtype = jnp.float32
    w_isz = jnp.dtype(compute_dtype).itemsize

    # One-time weight transpose + cast in the wrapper -> native [K, N] MXU layout.
    w1_t = jnp.asarray(w1.T, dtype=compute_dtype)      # (D, F)
    w2_t = jnp.asarray(w2.T, dtype=compute_dtype)      # (F, D)

    # Lane-pad D and F to 128 so every matmul operand / store is lane-dense.
    # Zero padding is exact: padded channels stay zero and are sliced off;
    # instance-norm stats are per-channel so real channels are unaffected.
    d_pad = _round_up(D, 128)
    f_pad = _round_up(F, 128)
    if d_pad != D or f_pad != F:
        # TODO(synk): keep the padded layout across adjacent N2S sub-layers to avoid
        # the extra HBM pad/slice round trips when D or F is not lane-aligned.
        x = jnp.pad(x, ((0, 0), (0, 0), (0, d_pad - D)))
        w1_t = jnp.pad(w1_t, ((0, d_pad - D), (0, f_pad - F)))
        w2_t = jnp.pad(w2_t, ((0, f_pad - F), (0, d_pad - D)))
        gamma = jnp.pad(gamma, (0, d_pad - D))
        beta = jnp.pad(beta, (0, d_pad - D))
    gamma2 = jnp.asarray(gamma, jnp.float32).reshape(1, d_pad)
    beta2 = jnp.asarray(beta, jnp.float32).reshape(1, d_pad)

    # Sublane multiple for the input dtype: 8 (f32), 16 (bf16).
    sub = 8 * max(1, 4 // in_isz)

    tile_budget, vmem_limit = _vmem_budgets()
    bt, nt, n_pad = _select_tiles(B, N, d_pad, f_pad, in_isz, out_isz, w_isz,
                                  sub, tile_budget, seq_tile)
    if n_pad != N:
        x = jnp.pad(x, ((0, 0), (0, n_pad - N), (0, 0)))   # zero rows: exact stats

    grid_b = B // bt
    n_tiles = n_pad // nt

    flops = 4 * B * N * D * F
    bytes_accessed = (B * n_pad * d_pad * (in_isz + out_isz)
                      + 2 * d_pad * f_pad * w_isz + 2 * d_pad * 4)
    cost = pl.CostEstimate(flops=flops, transcendentals=B * D,
                           bytes_accessed=bytes_accessed)

    def _run(single_buffer_weights):
        wkw = {"pipeline_mode": pl.Buffered(1)} if single_buffer_weights else {}
        if n_tiles == 1:
            kernel = functools.partial(_ffnorm_kernel_fused,
                                       n_valid=N, compute_dtype=compute_dtype)
            grid = (grid_b,)
            const = lambda b: (0, 0)
            in_specs = [
                pl.BlockSpec((bt, n_pad, d_pad), lambda b: (b, 0, 0)),   # x
                pl.BlockSpec((d_pad, f_pad), const, **wkw),              # W1^T
                pl.BlockSpec((f_pad, d_pad), const, **wkw),              # W2^T
                pl.BlockSpec((1, d_pad), const, **wkw),                  # gamma
                pl.BlockSpec((1, d_pad), const, **wkw),                  # beta
            ]
            out_spec = pl.BlockSpec((bt, n_pad, d_pad), lambda b: (b, 0, 0))
            scratch = []
            dim_sem = ("parallel",)
        else:
            kernel = functools.partial(_ffnorm_kernel_ntiled,
                                       n_valid=N, compute_dtype=compute_dtype)
            grid = (grid_b, n_tiles)
            const = lambda b, n: (0, 0)
            in_specs = [
                pl.BlockSpec((bt, nt, d_pad), lambda b, n: (b, n, 0)),   # x tile
                pl.BlockSpec((d_pad, f_pad), const, **wkw),              # W1^T
                pl.BlockSpec((f_pad, d_pad), const, **wkw),              # W2^T
                pl.BlockSpec((1, d_pad), const, **wkw),                  # gamma
                pl.BlockSpec((1, d_pad), const, **wkw),                  # beta
            ]
            out_spec = pl.BlockSpec((bt, n_pad, d_pad), lambda b, n: (b, 0, 0))
            scratch = [pltpu.VMEM((bt, n_pad, d_pad), jnp.float32)]      # residual
            dim_sem = ("parallel", "arbitrary")

        return pl.pallas_call(
            kernel,
            out_shape=jax.ShapeDtypeStruct((B, n_pad, d_pad), out_dtype),
            grid_spec=pltpu.PrefetchScalarGridSpec(
                num_scalar_prefetch=0, grid=grid,
                in_specs=in_specs, out_specs=out_spec, scratch_shapes=scratch),
            compiler_params=pltpu.CompilerParams(
                dimension_semantics=dim_sem, vmem_limit_bytes=vmem_limit),
            cost_estimate=cost,
        )(x, w1_t, w2_t, gamma2, beta2)

    try:
        out = _run(True)
    except Exception:
        # pipeline_mode=pl.Buffered(1) not supported on this JAX build — retry
        # with default (double-buffered) specs; everything else is unchanged.
        out = _run(False)

    if n_pad != N or d_pad != D:
        out = out[:, :N, :D]
    return out


# --------------------------------------------------------------------------- #
# Pure-JAX reference (mirrors the PyTorch module)
# --------------------------------------------------------------------------- #
def ffnorm_reference(x, w1, w2, gamma, beta, matmul_dtype=None):
    xf = x.astype(jnp.float32)
    if matmul_dtype is None:
        h = jnp.maximum(xf @ w1.T.astype(jnp.float32), 0.0)
        y = h @ w2.T.astype(jnp.float32) + xf
    else:
        xm = x.astype(matmul_dtype)
        h = jnp.dot(xm, w1.T.astype(matmul_dtype),
                    preferred_element_type=jnp.float32)
        h = jnp.maximum(h, 0.0)
        y = jnp.dot(h.astype(matmul_dtype), w2.T.astype(matmul_dtype),
                    preferred_element_type=jnp.float32) + xf
    mean = jnp.mean(y, axis=1, keepdims=True)
    var = jnp.mean((y - mean) ** 2, axis=1, keepdims=True)
    y_hat = (y - mean) / jnp.sqrt(var + _EPS)
    return (y_hat * gamma[None, None, :] + beta[None, None, :]).astype(x.dtype)


if __name__ == "__main__":
    # Shapes consistent with the real N2S encoder config:
    # embed_dim=128, feed_forward_hidden=512 (lane-dense, no channel padding).
    B, N, D, F = 4, 32, 128, 512

    key = jax.random.PRNGKey(0)
    kx, k1, k2, kg, kb = jax.random.split(key, 5)
    x = jax.random.normal(kx, (B, N, D), dtype=jnp.float32)
    w1 = jax.random.normal(k1, (F, D), dtype=jnp.float32) * (D ** -0.5)
    w2 = jax.random.normal(k2, (D, F), dtype=jnp.float32) * (F ** -0.5)
    gamma = 1.0 + 0.1 * jax.random.normal(kg, (D,), dtype=jnp.float32)
    beta = 0.1 * jax.random.normal(kb, (D,), dtype=jnp.float32)

    ref_f32 = ffnorm_reference(x, w1, w2, gamma, beta)
    ref_bf16 = ffnorm_reference(x, w1, w2, gamma, beta, matmul_dtype=jnp.bfloat16)

    # 1) Default path: bf16 GEMMs on the MXU, f32 residual + instance norm.
    out = jax.block_until_ready(ffnorm_sublayer(x, w1, w2, gamma, beta))
    assert out.shape == (B, N, D)
    err1 = float(jnp.max(jnp.abs(out - ref_bf16)))
    assert jnp.allclose(out, ref_bf16, atol=1e-2, rtol=1e-2), err1

    # 2) Exact-f32 path (tight check of layout / transposition / norm logic).
    out_f32 = jax.block_until_ready(
        ffnorm_sublayer(x, w1, w2, gamma, beta, use_bf16_matmul=False))
    err2 = float(jnp.max(jnp.abs(out_f32 - ref_f32)))
    assert jnp.allclose(out_f32, ref_f32, atol=5e-4, rtol=5e-4), err2

    # 3) Sequence-tiled path (forced small tile to exercise the long-N fallback).
    out_nt = jax.block_until_ready(
        ffnorm_sublayer(x, w1, w2, gamma, beta, seq_tile=16))
    err3 = float(jnp.max(jnp.abs(out_nt - ref_bf16)))
    assert jnp.allclose(out_nt, ref_bf16, atol=1e-2, rtol=1e-2), err3

    print("KERNEL_OK")
</pallas_src>

<mosaic_0001>
module attributes {stable_mosaic.version = 11 : i64} {
  func.func @_ffnorm_kernel_fused(%arg0: i32, %arg1: memref<2x32x128xf32, #tpu.memory_space<vmem>>, %arg2: memref<128x512xbf16, #tpu.memory_space<vmem>>, %arg3: memref<512x128xbf16, #tpu.memory_space<vmem>>, %arg4: memref<1x128xf32, #tpu.memory_space<vmem>>, %arg5: memref<1x128xf32, #tpu.memory_space<vmem>>, %arg6: memref<2x32x128xf32, #tpu.memory_space<vmem>>) attributes {dimension_semantics = [#tpu.dimension_semantics<parallel>], iteration_bounds = array<i64: 2>, scalar_prefetch = 0 : i64, scratch_operands = 0 : i64, tpu.core_type = #tpu.core_type<tc>, window_params = [{transform_indices = @transform_0, window_bounds = array<i64: 2, 32, 128>}, {pipeline_mode = #tpu.pipeline_mode<synchronous>, transform_indices = @transform_1, window_bounds = array<i64: 128, 512>}, {pipeline_mode = #tpu.pipeline_mode<synchronous>, transform_indices = @transform_2, window_bounds = array<i64: 512, 128>}, {pipeline_mode = #tpu.pipeline_mode<synchronous>, transform_indices = @transform_3, window_bounds = array<i64: 1, 128>}, {pipeline_mode = #tpu.pipeline_mode<synchronous>, transform_indices = @transform_4, window_bounds = array<i64: 1, 128>}, {transform_indices = @transform_5, window_bounds = array<i64: 2, 32, 128>}]} {
    %c0 = arith.constant 0 : index
    %c0_0 = arith.constant 0 : index
    %c0_1 = arith.constant 0 : index
    %0 = vector.load %arg1[%c0, %c0_0, %c0_1] : memref<2x32x128xf32, #tpu.memory_space<vmem>>, vector<2x32x128xf32>
    %1 = vector.shape_cast %0 : vector<2x32x128xf32> to vector<64x128xf32>
    %2 = arith.truncf %1 : vector<64x128xf32> to vector<64x128xbf16>
    %c0_2 = arith.constant 0 : index
    %c0_3 = arith.constant 0 : index
    %3 = vector.load %arg2[%c0_2, %c0_3] : memref<128x512xbf16, #tpu.memory_space<vmem>>, vector<128x512xbf16>
    %cst = arith.constant dense<0.000000e+00> : vector<64x512xf32>
    %4 = tpu.matmul %2, %3, %cst {dimension_numbers = #tpu.dot_dimension_numbers<[1], [0], [0], [1], [0, 0, 1, 1], [], []>} : vector<64x128xbf16>, vector<128x512xbf16>, vector<64x512xf32> -> vector<64x512xf32>
    %cst_4 = arith.constant 0.000000e+00 : f32
    %5 = vector.broadcast %cst_4 : f32 to vector<64x512xf32>
    %6 = arith.maximumf %4, %5 : vector<64x512xf32>
    %7 = arith.truncf %6 : vector<64x512xf32> to vector<64x512xbf16>
    %c0_5 = arith.constant 0 : index
    %c0_6 = arith.constant 0 : index
    %8 = vector.load %arg3[%c0_5, %c0_6] : memref<512x128xbf16, #tpu.memory_space<vmem>>, vector<512x128xbf16>
    %cst_7 = arith.constant dense<0.000000e+00> : vector<64x128xf32>
    %9 = tpu.matmul %7, %8, %cst_7 {dimension_numbers = #tpu.dot_dimension_numbers<[1], [0], [0], [1], [0, 0, 1, 1], [], []>} : vector<64x512xbf16>, vector<512x128xbf16>, vector<64x128xf32> -> vector<64x128xf32>
    %10 = vector.shape_cast %9 : vector<64x128xf32> to vector<2x32x128xf32>
    %11 = arith.addf %10, %0 : vector<2x32x128xf32>
    %cst_8 = arith.constant dense<0.000000e+00> : vector<2x128xf32>
    %12 = vector.multi_reduction <add>, %11, %cst_8 [1] : vector<2x32x128xf32> to vector<2x128xf32>
    %13 = vector.shape_cast %12 : vector<2x128xf32> to vector<2x1x128xf32>
    %cst_9 = arith.constant 3.125000e-02 : f32
    %14 = vector.broadcast %cst_9 : f32 to vector<2x1x128xf32>
    %15 = arith.mulf %13, %14 : vector<2x1x128xf32>
    %16 = vector.broadcast %15 : vector<2x1x128xf32> to vector<2x32x128xf32>
    %17 = arith.subf %11, %16 : vector<2x32x128xf32>
    %18 = arith.mulf %17, %17 : vector<2x32x128xf32>
    %cst_10 = arith.constant dense<0.000000e+00> : vector<2x128xf32>
    %19 = vector.multi_reduction <add>, %18, %cst_10 [1] : vector<2x32x128xf32> to vector<2x128xf32>
    %20 = vector.shape_cast %19 : vector<2x128xf32> to vector<2x1x128xf32>
    %cst_11 = arith.constant 3.125000e-02 : f32
    %21 = vector.broadcast %cst_11 : f32 to vector<2x1x128xf32>
    %22 = arith.mulf %20, %21 : vector<2x1x128xf32>
    %cst_12 = arith.constant 9.99999974E-6 : f32
    %23 = vector.broadcast %cst_12 : f32 to vector<2x1x128xf32>
    %24 = arith.addf %22, %23 : vector<2x1x128xf32>
    %25 = math.rsqrt %24 : vector<2x1x128xf32>
    %c0_13 = arith.constant 0 : index
    %c0_14 = arith.constant 0 : index
    %26 = vector.load %arg4[%c0_13, %c0_14] : memref<1x128xf32, #tpu.memory_space<vmem>>, vector<1x128xf32>
    %27 = vector.shape_cast %26 : vector<1x128xf32> to vector<1x1x128xf32>
    %c0_15 = arith.constant 0 : index
    %c0_16 = arith.constant 0 : index
    %28 = vector.load %arg5[%c0_15, %c0_16] : memref<1x128xf32, #tpu.memory_space<vmem>>, vector<1x128xf32>
    %29 = vector.shape_cast %28 : vector<1x128xf32> to vector<1x1x128xf32>
    %30 = vector.broadcast %25 : vector<2x1x128xf32> to vector<2x32x128xf32>
    %31 = arith.mulf %17, %30 : vector<2x32x128xf32>
    %32 = vector.broadcast %27 : vector<1x1x128xf32> to vector<2x32x128xf32>
    %33 = arith.mulf %31, %32 : vector<2x32x128xf32>
    %34 = vector.broadcast %29 : vector<1x1x128xf32> to vector<2x32x128xf32>
    %35 = arith.addf %33, %34 : vector<2x32x128xf32>
    %c0_17 = arith.constant 0 : index
    %c0_18 = arith.constant 0 : index
    %c0_19 = arith.constant 0 : index
    %36 = vector.load %arg6[%c0_17, %c0_18, %c0_19] : memref<2x32x128xf32, #tpu.memory_space<vmem>>, vector<2x32x128xf32>
    tpu.vector_store %arg6[%c0_17, %c0_18, %c0_19], %35 {strides = array<i32>} : memref<2x32x128xf32, #tpu.memory_space<vmem>>, vector<2x32x128xf32>,
    return
  }
  func.func @transform_0(%arg0: i32) -> (i32, i32, i32) {
    %c0_i32 = arith.constant 0 : i32
    %c0_i32_0 = arith.constant 0 : i32
    %c0_i32_1 = arith.constant 0 : i32
    return %arg0, %c0_i32, %c0_i32_0 : i32, i32, i32
  }
  func.func @transform_1(%arg0: i32) -> (i32, i32) {
    %c0_i32 = arith.constant 0 : i32
    %c0_i32_0 = arith.constant 0 : i32
    %c0_i32_1 = arith.constant 0 : i32
    return %c0_i32, %c0_i32_0 : i32, i32
  }
  func.func @transform_2(%arg0: i32) -> (i32, i32) {
    %c0_i32 = arith.constant 0 : i32
    %c0_i32_0 = arith.constant 0 : i32
    %c0_i32_1 = arith.constant 0 : i32
    return %c0_i32, %c0_i32_0 : i32, i32
  }
  func.func @transform_3(%arg0: i32) -> (i32, i32) {
    %c0_i32 = arith.constant 0 : i32
    %c0_i32_0 = arith.constant 0 : i32
    %c0_i32_1 = arith.constant 0 : i32
    return %c0_i32, %c0_i32_0 : i32, i32
  }
  func.func @transform_4(%arg0: i32) -> (i32, i32) {
    %c0_i32 = arith.constant 0 : i32
    %c0_i32_0 = arith.constant 0 : i32
    %c0_i32_1 = arith.constant 0 : i32
    return %c0_i32, %c0_i32_0 : i32, i32
  }
  func.func @transform_5(%arg0: i32) -> (i32, i32, i32) {
    %c0_i32 = arith.constant 0 : i32
    %c0_i32_0 = arith.constant 0 : i32
    %c0_i32_1 = arith.constant 0 : i32
    return %arg0, %c0_i32, %c0_i32_0 : i32, i32, i32
  }
}

module attributes {stable_mosaic.version = 11 : i64} {
  func.func @_ffnorm_kernel_fused(%arg0: i32, %arg1: memref<2x32x128xf32, #tpu.memory_space<vmem>>, %arg2: memref<128x512xbf16, #tpu.memory_space<vmem>>, %arg3: memref<512x128xbf16, #tpu.memory_space<vmem>>, %arg4: memref<1x128xf32, #tpu.memory_space<vmem>>, %arg5: memref<1x128xf32, #tpu.memory_space<vmem>>, %arg6: memref<2x32x128xf32, #tpu.memory_space<vmem>>) attributes {dimension_semantics = [#tpu.dimension_semantics<parallel>], iteration_bounds = array<i64: 2>, scalar_prefetch = 0 : i64, scratch_operands = 0 : i64, tpu.core_type = #tpu.core_type<tc>, window_params = [{transform_indices = @transform_0, window_bounds = array<i64: 2, 32, 128>}, {pipeline_mode = #tpu.pipeline_mode<synchronous>, transform_indices = @transform_1, window_bounds = array<i64: 128, 512>}, {pipeline_mode = #tpu.pipeline_mode<synchronous>, transform_indices = @transform_2, window_bounds = array<i64: 512, 128>}, {pipeline_mode = #tpu.pipeline_mode<synchronous>, transform_indices = @transform_3, window_bounds = array<i64: 1, 128>}, {pipeline_mode = #tpu.pipeline_mode<synchronous>, transform_indices = @transform_4, window_bounds = array<i64: 1, 128>}, {transform_indices = @transform_5, window_bounds = array<i64: 2, 32, 128>}]} {
    %c0 = arith.constant 0 : index
    %c0_0 = arith.constant 0 : index
    %c0_1 = arith.constant 0 : index
    %0 = vector.load %arg1[%c0, %c0_0, %c0_1] : memref<2x32x128xf32, #tpu.memory_space<vmem>>, vector<2x32x128xf32>
    %1 = vector.shape_cast %0 : vector<2x32x128xf32> to vector<64x128xf32>
    %2 = arith.truncf %1 : vector<64x128xf32> to vector<64x128xbf16>
    %c0_2 = arith.constant 0 : index
    %c0_3 = arith.constant 0 : index
    %3 = vector.load %arg2[%c0_2, %c0_3] : memref<128x512xbf16, #tpu.memory_space<vmem>>, vector<128x512xbf16>
    %cst = arith.constant dense<0.000000e+00> : vector<64x512xf32>
    %4 = tpu.matmul %2, %3, %cst {dimension_numbers = #tpu.dot_dimension_numbers<[1], [0], [0], [1], [0, 0, 1, 1], [], []>} : vector<64x128xbf16>, vector<128x512xbf16>, vector<64x512xf32> -> vector<64x512xf32>
    %cst_4 = arith.constant 0.000000e+00 : f32
    %5 = vector.broadcast %cst_4 : f32 to vector<64x512xf32>
    %6 = arith.maximumf %4, %5 : vector<64x512xf32>
    %7 = arith.truncf %6 : vector<64x512xf32> to vector<64x512xbf16>
    %c0_5 = arith.constant 0 : index
    %c0_6 = arith.constant 0 : index
    %8 = vector.load %arg3[%c0_5, %c0_6] : memref<512x128xbf16, #tpu.memory_space<vmem>>, vector<512x128xbf16>
    %cst_7 = arith.constant dense<0.000000e+00> : vector<64x128xf32>
    %9 = tpu.matmul %7, %8, %cst_7 {dimension_numbers = #tpu.dot_dimension_numbers<[1], [0], [0], [1], [0, 0, 1, 1], [], []>} : vector<64x512xbf16>, vector<512x128xbf16>, vector<64x128xf32> -> vector<64x128xf32>
    %10 = vector.shape_cast %9 : vector<64x128xf32> to vector<2x32x128xf32>
    %11 = arith.addf %10, %0 : vector<2x32x128xf32>
    %cst_8 = arith.constant dense<0.000000e+00> : vector<2x128xf32>
    %12 = vector.multi_reduction <add>, %11, %cst_8 [1] : vector<2x32x128xf32> to vector<2x128xf32>
    %13 = vector.shape_cast %12 : vector<2x128xf32> to vector<2x1x128xf32>
    %cst_9 = arith.constant 3.125000e-02 : f32
    %14 = vector.broadcast %cst_9 : f32 to vector<2x1x128xf32>
    %15 = arith.mulf %13, %14 : vector<2x1x128xf32>
    %16 = vector.broadcast %15 : vector<2x1x128xf32> to vector<2x32x128xf32>
    %17 = arith.subf %11, %16 : vector<2x32x128xf32>
    %18 = arith.mulf %17, %17 : vector<2x32x128xf32>
    %cst_10 = arith.constant dense<0.000000e+00> : vector<2x128xf32>
    %19 = vector.multi_reduction <add>, %18, %cst_10 [1] : vector<2x32x128xf32> to vector<2x128xf32>
    %20 = vector.shape_cast %19 : vector<2x128xf32> to vector<2x1x128xf32>
    %cst_11 = arith.constant 3.125000e-02 : f32
    %21 = vector.broadcast %cst_11 : f32 to vector<2x1x128xf32>
    %22 = arith.mulf %20, %21 : vector<2x1x128xf32>
    %cst_12 = arith.constant 9.99999974E-6 : f32
    %23 = vector.broadcast %cst_12 : f32 to vector<2x1x128xf32>
    %24 = arith.addf %22, %23 : vector<2x1x128xf32>
    %25 = math.rsqrt %24 : vector<2x1x128xf32>
    %c0_13 = arith.constant 0 : index
    %c0_14 = arith.constant 0 : index
    %26 = vector.load %arg4[%c0_13, %c0_14] : memref<1x128xf32, #tpu.memory_space<vmem>>, vector<1x128xf32>
    %27 = vector.shape_cast %26 : vector<1x128xf32> to vector<1x1x128xf32>
    %c0_15 = arith.constant 0 : index
    %c0_16 = arith.constant 0 : index
    %28 = vector.load %arg5[%c0_15, %c0_16] : memref<1x128xf32, #tpu.memory_space<vmem>>, vector<1x128xf32>
    %29 = vector.shape_cast %28 : vector<1x128xf32> to vector<1x1x128xf32>
    %30 = vector.broadcast %25 : vector<2x1x128xf32> to vector<2x32x128xf32>
    %31 = arith.mulf %17, %30 : vector<2x32x128xf32>
    %32 = vector.broadcast %27 : vector<1x1x128xf32> to vector<2x32x128xf32>
    %33 = arith.mulf %31, %32 : vector<2x32x128xf32>
    %34 = vector.broadcast %29 : vector<1x1x128xf32> to vector<2x32x128xf32>
    %35 = arith.addf %33, %34 : vector<2x32x128xf32>
    %c0_17 = arith.constant 0 : index
    %c0_18 = arith.constant 0 : index
    %c0_19 = arith.constant 0 : index
    %36 = vector.load %arg6[%c0_17, %c0_18, %c0_19] : memref<2x32x128xf32, #tpu.memory_space<vmem>>, vector<2x32x128xf32>
    tpu.vector_store %arg6[%c0_17, %c0_18, %c0_19], %35 {strides = array<i32>} : memref<2x32x128xf32, #tpu.memory_space<vmem>>, vector<2x32x128xf32>,
    return
  }
  func.func @transform_0(%arg0: i32) -> (i32, i32, i32) {
    %c0_i32 = arith.constant 0 : i32
    %c0_i32_0 = arith.constant 0 : i32
    %c0_i32_1 = arith.constant 0 : i32
    return %arg0, %c0_i32, %c0_i32_0 : i32, i32, i32
  }
  func.func @transform_1(%arg0: i32) -> (i32, i32) {
    %c0_i32 = arith.constant 0 : i32
    %c0_i32_0 = arith.constant 0 : i32
    %c0_i32_1 = arith.constant 0 : i32
    return %c0_i32, %c0_i32_0 : i32, i32
  }
  func.func @transform_2(%arg0: i32) -> (i32, i32) {
    %c0_i32 = arith.constant 0 : i32
    %c0_i32_0 = arith.constant 0 : i32
    %c0_i32_1 = arith.constant 0 : i32
    return %c0_i32, %c0_i32_0 : i32, i32
  }
  func.func @transform_3(%arg0: i32) -> (i32, i32) {
    %c0_i32 = arith.constant 0 : i32
    %c0_i32_0 = arith.constant 0 : i32
    %c0_i32_1 = arith.constant 0 : i32
    return %c0_i32, %c0_i32_0 : i32, i32
  }
  func.func @transform_4(%arg0: i32) -> (i32, i32) {
    %c0_i32 = arith.constant 0 : i32
    %c0_i32_0 = arith.constant 0 : i32
    %c0_i32_1 = arith.constant 0 : i32
    return %c0_i32, %c0_i32_0 : i32, i32
  }
  func.func @transform_5(%arg0: i32) -> (i32, i32, i32) {
    %c0_i32 = arith.constant 0 : i32
    %c0_i32_0 = arith.constant 0 : i32
    %c0_i32_1 = arith.constant 0 : i32
    return %arg0, %c0_i32, %c0_i32_0 : i32, i32, i32
  }
}

</mosaic_0001>

<bundles_post_ra>
// kernel: tpu_custom_call.1
= control target key start
LH: loop header
LB: loop body
LE: loop exit
PB: predicated region body
PF: predicated region fallthrough
CT: control target
= control target key end

     0   :  { %10 = vsyncpa [#allocation3], 0  ;;  %s2052_s0 = inlined_call_operand.hbm [shape: f32[4,32,128], index: 0, kind: input, shape index: {}]   ;;  %s2053_s1 = inlined_call_operand.hbm [shape: bf16[128,512], index: 1, kind: input, shape index: {}]   ;;  %s2054_s2 = inlined_call_operand.hbm [shape: bf16[512,128], index: 2, kind: input, shape index: {}]   ;;  %s2055_s3 = inlined_call_operand.vmem [shape: f32[1,128], index: 3, kind: input, shape index: {}]   ;;  %s2056_s4 = inlined_call_operand.vmem [shape: f32[1,128], index: 4, kind: input, shape index: {}]   ;;  %s2057_s5 = inlined_call_operand.hbm [shape: f32[4,32,128], index: 5, kind: output, shape index: {}]  }
   0x1   :  { %12 = vsyncpa [#allocation3 + $0x1], 0 }
   0x2   :  { %13 = vsyncpa [#allocation6], 0 }
   0x3   :  { %14 = vsyncpa [#allocation4], 0 }
   0x4   :  { %16 = vsyncpa [#allocation4 + $0x1], 0  ;;  %s1804_s18 = smov 0   ;;  %s1806_s19 = smov 0  }
   0x5   :  { %s1808_s20 = smov 0   ;;  %s1810_s21 = smov 0  }
   0x6 LB: > { %s1825_s22 = sadd.s32 4294967295, %s1759_s21   ;;  %s1281_s23 = sadd.s32 4294967294, %s1759_s21   ;;  %s1759_s21 = sphi %s1810_s21, %s2079_s21   ;;  %s1755_s20 = sphi %s1808_s20, %s2078_s20   ;;  %s1751_s19 = sphi %s1806_s19, %s2077_s19   ;;  %s1747_s18 = sphi %s1804_s18, %s2076_s18  }
   0x7   : > { %p42_p0 = scmp.ne.s32.totalorder %s1751_s19, %s1747_s18  ;;  %p2058_p1 = scmp.eq.s32.totalorder %s1825_s22, 0 }
   0x8   : > { %p156_p3 = scmp.eq.s32.totalorder %s1281_s23, 1  ;;  %p1282_p5 = scmp.ge.s32.totalorder %s1759_s21, 1 }
   0x9   : > { %p1834_p4 = por %p2058_p1, %p42_p0  ;;  %p163_p7 = scmp.lt.s32.totalorder %s1759_s21, 3 }
   0xa   : > { %p1839_p6 = por %p156_p3, %p42_p0  ;;  %s1761_s27 = smov [#allocation5]  }
   0xb   : > { %s2062_s24 = scalar_select %p1834_p4, 1, 0 }
   0xc   : > { %s2063_s25 = scalar_select %p1839_p6, 1, 0 }
   0xd   : > { %p1844_p8 = pnand %p1282_p5, %p163_p7  ;;  %s175_s28 = sshll.u32 %s1761_s27, 4  ;;  %s176_s28 = int_to_ptr.vmem [resolvable:$true] %s175_s28 }
   0xe   : > { %s1762_s30 = smov [#allocation7]   ;;  %s1622_s7 = scalar_lea.vmem %s176_s28, 4096 }
   0xf   : > { %s2064_s26 = scalar_select %p1844_p8, 1, 0 }
  0x10   : > { %p1463_p9 = pneg %p1844_p8  ;;  %s188_s6 = sshll.u32 %s1762_s30, 4  ;;  %s189_s6 = int_to_ptr.vmem [resolvable:$true] %s188_s6 }
  0x11   : > { %p1623_p13 = scmp.ne.s32.totalorder %s176_s28, %s1622_s7  ;;  %p1630_p5 = scmp.lt.s32.totalorder %s176_s28, %s176_s28 }
  0x12   : > { %p1853_p11 = pnand %p1463_p9, %p2058_p1  ;;  %p1631_p7 = scmp.lt.s32.totalorder %s1622_s7, %s1622_s7 }
  0x14   : > { %p1613_p12 = pneg %p1853_p11  ;;  %p1632_p10 = por %p1631_p7, %p1630_p5 }
  0x16   : > { %p1625_p0 = pnand %p1623_p13, %p1613_p12 }
  0x18   : > { %p1626_p3 = pneg %p1625_p0 }
  0x1a   : > { %p1633_p9 = pnand %p1632_p10, %p1626_p3 }
  0x1c   : > { %1636 = shalt.err (!%p1633_p9)
}
  0x1d   : > { %s1763_s8 = smov 256   ;;  %s1764_s9 = smov 16  }
  0x1e   : > { %1466 = dma.hbm_to_vmem [thread:$0]  (!%p1853_p11), %s2053_s1, 4096, %s176_s28, [#allocation6], %s1763_s8, %s1763_s8, %s1764_s9  }
  0x1f   : > { %s1648_s12 = scalar_lea.vmem %s189_s6, 4096  ;;  %p1656_p2 = scmp.lt.s32.totalorder %s189_s6, %s189_s6 }
  0x20   : > { %p1649_p1 = scmp.ne.s32.totalorder %s189_s6, %s1648_s12  ;;  %p1657_p6 = scmp.lt.s32.totalorder %s1648_s12, %s1648_s12 }
  0x22   : > { %p1651_p13 = pnand %p1649_p1, %p1613_p12  ;;  %p1658_p5 = por %p1657_p6, %p1656_p2 }
  0x24   : > { %p1652_p0 = pneg %p1651_p13 }
  0x26   : > { %p1659_p10 = pnand %p1658_p5, %p1652_p0 }
  0x28   : > { %1662 = shalt.err (!%p1659_p10)
}
  0x29   : > { %s1765_s13 = smov 64   ;;  %s1766_s14 = smov 4  }
  0x2a   : > { %1469 = dma.hbm_to_vmem [thread:$0]  (!%p1853_p11), %s2054_s2, 4096, %s189_s6, [#allocation6], %s1765_s13, %s1765_s13, %s1766_s14  }
  0x2b   : > { %s1876_s17 = sadd.s32 1, %s1759_s21   ;;  %s29_s27 = sadd.s32 1, %s1755_s20 }
  0x2c   : > { %s26_s23 = ssub.s32 %s1759_s21, %s1876_s17  ;;  %p36_p2 = scmp.ne.s32.totalorder %s1755_s20, %s1751_s19 }
  0x2d   : > { %p27_p1 = scmp.eq.s32.totalorder %s26_s23, 0  ;;  %p37_p6 = scmp.eq.s32.totalorder %s1759_s21, 0 }
  0x2e   : > { %p2066_p3 = scmp.eq.s32.totalorder %s1825_s22, 1  ;;  %p1480_p9 = scmp.lt.s32.totalorder %s1759_s21, 2 }
  0x2f   : > { %s1885_s28 = scalar_select %p27_p1, %s1755_s20, %s29_s27  }
  0x30   : > { %p38_p12 = por %p37_p6, %p36_p2  ;;  %p1889_p7 = por %p2066_p3, %p36_p2 }
  0x31   : > { %s208_s29 = sand.u32 1, %s1755_s20   ;;  %s1368_s6 = sshll.u32 %s1759_s21, 10 }
  0x32   : > { %s2067_s30 = scalar_select %p1889_p7, 1, 0 }
  0x33   : > { %s1286_s7 = sshll.u32 %s208_s29, 6  ;;  %s1899_s10 = scalar_lea.hbm %s2052_s0, %s1368_s6 }
  0x34   : > { %s212_s11 = scalar_lea.vmem [#allocation2], %s1286_s7  ;;  %p1903_p11 = pnand %p1480_p9, %p38_p12 }
  0x35   : > { %s220_s12 = sshll.u32 %s212_s11, 4  ;;  %s1907_s14 = scalar_lea.sflag [#allocation3], %s208_s29  ;;  %s1901_s12 = int_to_ptr.vmem [resolvable:$true] %s220_s12 }
  0x36   : > { %s1663_s15 = scalar_lea.hbm %s1899_s10, 1024  ;;  %p1665_p0 = pneg %p1903_p11 }
  0x37   : > { %p1664_p13 = scmp.ne.s32.totalorder %s1899_s10, %s1663_s15  ;;  %s1668_s27 = scalar_lea.hbm %s2052_s0, 2048 }
  0x38   : > { %p1669_p1 = scmp.lt.s32.totalorder %s1899_s10, %s2052_s0  ;;  %p1670_p2 = scmp.lt.s32.totalorder %s1668_s27, %s1663_s15 }
  0x39   : > { %p1666_p5 = pnand %p1665_p0, %p1664_p13 }
  0x3a   : > { %p1671_p6 = por %p1670_p2, %p1669_p1 }
  0x3b   : > { %p1667_p10 = pneg %p1666_p5 }
  0x3d   : > { %p1672_p12 = pnand %p1671_p6, %p1667_p10 }
  0x3f   : > { %1675 = shalt.err (!%p1672_p12)
}
  0x40   : > { %s1676_s29 = scalar_lea.vmem %s1901_s12, 1024  ;;  %s1767_s8 = smov [#allocation2]  }
  0x41   : > { %p1677_p3 = scmp.ne.s32.totalorder %s1901_s12, %s1676_s29  ;;  %s1681_s9 = sshll.u32 %s1767_s8, 4  ;;  %s1682_s9 = int_to_ptr.vmem [resolvable:$false] %s1681_s9 }
  0x42   : > { %s1683_s11 = scalar_lea.vmem %s1682_s9, 2048  ;;  %p1684_p5 = scmp.lt.s32.totalorder %s1901_s12, %s1682_s9 }
  0x43   : > { %p1679_p9 = pnand %p1677_p3, %p1665_p0  ;;  %p1685_p7 = scmp.lt.s32.totalorder %s1683_s11, %s1676_s29 }
  0x45   : > { %p1680_p13 = pneg %p1679_p9  ;;  %p1686_p4 = por %p1685_p7, %p1684_p5 }
  0x47   : > { %p1687_p8 = pnand %p1686_p4, %p1680_p13 }
  0x49   : > { %1690 = shalt.err (!%p1687_p8)
}
  0x4a   : > { %s1768_s15 = smov 128   ;;  %s1769_s16 = smov 8  }
  0x4b   : > { %1473 = dma.hbm_to_vmem [thread:$0]  (!%p1903_p11), %s1899_s10, 1024, %s1901_s12, %s1907_s14, %s1768_s15, %s1768_s15, %s1769_s16  }
  0x4c   : > { %p2069_p0 = scmp.ne.s32.totalorder %s2064_s26, 0 }
  0x4d   : > { %s1931_s23 = sand.u32 (!%p2069_p0), 1, %s1751_s19   ;;  %p2070_p4 = scmp.ne.s32.totalorder (!%p2069_p0), %s2062_s24, 0 }
  0x4e   : > { %232 = sbr.rel (%p2069_p0) target bundleno = 632 (0x278), region = 40  ;;  %s1291_s27 = sshll.u32 (!%p2069_p0), %s1931_s23, 6 }
  0x4f   : > { %s235_s7 = scalar_lea.sflag (!%p2069_p0), [#allocation3], %s1931_s23  ;;  %s1937_s6 = scalar_lea.vmem (!%p2069_p0), [#allocation2], %s1291_s27 }
  0x53   : > { %1734 = dma.done.wait (%p2070_p4), %s235_s7, 1024  }
  0x54   : > { %1736 = vsyncadd (%p2070_p4), %s235_s7, 4294966272  ;;  %p2071_p8 = scmp.eq.s32.totalorder %s1825_s22, 0 }
  0x56   : > { %1738 = dma.done.wait (%p2071_p8), [#allocation6], 8192   ;;  %p2072_p7 = pmov %p2071_p8 }
  0x57   : > { %v1770_v0 = vmov 0   ;;  %v1527_v1 = vld [vmem:[#allocation5 + $0xe4] ss:$16 sps:$4 sm:$0xff]   ;;  %v1529_v2 = vld [vmem:[#allocation5 + $0xec] ss:$16 sps:$4 sm:$0xff]   ;;  %s272_s13 = scalar_lea.vmem [#allocation8], %s1291_s27 }
  0x58   : > { %1740 = vsyncadd (%p2072_p7), [#allocation6], 4294959104  ;;  %512 = vmatprep.mubr.bf16.mxu0 %v1770_v0  ;;  %585 = vmatprep.mubr.bf16.mxu1 %v1770_v0  ;;  %v1531_v3 = vld [vmem:[#allocation5 + $0xe0] ss:$16 sps:$4 sm:$0xff]   ;;  %v1532_v4 = vld [vmem:[#allocation5 + $0xe8] ss:$16 sps:$4 sm:$0xff]  }
  0x59   : > { %480 = vmatprep.subr.bf16.mxu0 %v1527_v1  ;;  %553 = vmatprep.subr.bf16.mxu1 %v1529_v2  ;;  %v1533_v5 = vld [vmem:[#allocation5 + $0xc4] ss:$16 sps:$4 sm:$0xff]   ;;  %v1535_v6 = vld [vmem:[#allocation5 + $0xcc] ss:$16 sps:$4 sm:$0xff]   ;;  %v1537_v7 = vld [vmem:[#allocation5 + $0xc0] ss:$16 sps:$4 sm:$0xff]  }
  0x5a   : > { %481 = vmatpush1.bf16.msra.mxu0 %v1531_v3  ;;  %554 = vmatpush1.bf16.msra.mxu1 %v1532_v4  ;;  %v1538_v8 = vld [vmem:[#allocation5 + $0xc8] ss:$16 sps:$4 sm:$0xff]   ;;  %v1539_v9 = vld [vmem:[#allocation5 + $0xa4] ss:$16 sps:$4 sm:$0xff]   ;;  %v1541_v10 = vld [vmem:[#allocation5 + $0xac] ss:$16 sps:$4 sm:$0xff]  }
  0x5b   : > { %482 = vmatprep.subr.bf16.mxu0 %v1533_v5  ;;  %555 = vmatprep.subr.bf16.mxu1 %v1535_v6  ;;  %v1543_v11 = vld [vmem:[#allocation5 + $0xa0] ss:$16 sps:$4 sm:$0xff]   ;;  %v1544_v12 = vld [vmem:[#allocation5 + $0xa8] ss:$16 sps:$4 sm:$0xff]   ;;  %v1545_v13 = vld [vmem:[#allocation5 + $0x84] ss:$16 sps:$4 sm:$0xff]  }
  0x5c   : > { %v1547_v14 = vld [vmem:[#allocation5 + $0x8c] ss:$16 sps:$4 sm:$0xff]   ;;  %v1549_v15 = vld [vmem:[#allocation5 + $0x80] ss:$16 sps:$4 sm:$0xff]   ;;  %v1550_v16 = vld [vmem:[#allocation5 + $0x88] ss:$16 sps:$4 sm:$0xff]  }
  0x5d   : > { %v1551_v17 = vld [vmem:[#allocation5 + $0x64] ss:$16 sps:$4 sm:$0xff]   ;;  %v1553_v18 = vld [vmem:[#allocation5 + $0x6c] ss:$16 sps:$4 sm:$0xff]   ;;  %v1555_v19 = vld [vmem:[#allocation5 + $0x60] ss:$16 sps:$4 sm:$0xff]  }
  0x5e   : > { %483 = vmatpush1.bf16.msra.mxu0 %v1537_v7  ;;  %556 = vmatpush1.bf16.msra.mxu1 %v1538_v8  ;;  %v1556_v20 = vld [vmem:[#allocation5 + $0x68] ss:$16 sps:$4 sm:$0xff]   ;;  %v1557_v21 = vld [vmem:[#allocation5 + $0x44] ss:$16 sps:$4 sm:$0xff]   ;;  %v1559_v22 = vld [vmem:[#allocation5 + $0x4c] ss:$16 sps:$4 sm:$0xff]  }
  0x5f   : > { %484 = vmatprep.subr.bf16.mxu0 %v1539_v9  ;;  %557 = vmatprep.subr.bf16.mxu1 %v1541_v10  ;;  %v1561_v23 = vld [vmem:[#allocation5 + $0x40] ss:$16 sps:$4 sm:$0xff]   ;;  %v1562_v24 = vld [vmem:[#allocation5 + $0x48] ss:$16 sps:$4 sm:$0xff]   ;;  %v1563_v25 = vld [vmem:[#allocation5 + $0x24] ss:$16 sps:$4 sm:$0xff]  }
  0x60   : > { %v1565_v26 = vld [vmem:[#allocation5 + $0x2c] ss:$16 sps:$4 sm:$0xff]   ;;  %v1567_v27 = vld [vmem:[#allocation5 + $0x20] ss:$16 sps:$4 sm:$0xff]   ;;  %v1568_v28 = vld [vmem:[#allocation5 + $0x28] ss:$16 sps:$4 sm:$0xff]  }
  0x61   : > { %v1569_v29 = vld [vmem:[#allocation5 + $0x4] ss:$16 sps:$4 sm:$0xff]   ;;  %v1571_v30 = vld [vmem:[#allocation5 + $0xc] ss:$16 sps:$4 sm:$0xff]   ;;  %v1573_v31 = vld [vmem:[#allocation5] ss:$16 sps:$4 sm:$0xff]  }
  0x62   : > { %485 = vmatpush1.bf16.msra.mxu0 %v1543_v11  ;;  %558 = vmatpush1.bf16.msra.mxu1 %v1544_v12  ;;  %v1574_v32 = vld [vmem:[#allocation5 + $0x8] ss:$16 sps:$4 sm:$0xff]   ;;  %v1950_v33 = vld [vmem:[%s1937_s6] sm:$0xff]  ;;  %v1579_v40 = vld [vmem:[#allocation7 + $0x70] sm:$0xff]   ;;  %s1370_s14 = sshll.u32 %s1825_s22, 10  ;;  %s1189_s29 = sshll.u32 %s272_s13, 4  ;;  %s2009_s29 = int_to_ptr.vmem [resolvable:$true] %s1189_s29 }
  0x63   : > { %486 = vmatprep.subr.bf16.mxu0 %v1545_v13  ;;  %559 = vmatprep.subr.bf16.mxu1 %v1547_v14  ;;  %v1953_v34 = vld [vmem:[%s1937_s6 + $0x8] sm:$0xff]  ;;  %v1575_v35 = vld [vmem:[#allocation7 + $0x78] sm:$0xff]   ;;  %v1958_v41 = vld [vmem:[%s1937_s6 + $0x10] sm:$0xff]  ;;  %s2007_s11 = scalar_lea.hbm %s2057_s5, %s1370_s14  ;;  %s1175_s22 = scalar_lea.sflag [#allocation4], %s1931_s23 }
  0x64   : > { %v1576_v36 = vld [vmem:[#allocation7 + $0xf8] sm:$0xff]   ;;  %v284_v37 = vpack.c.bf16 %v1953_v34, %v1950_v33  ;;  %v1580_v43 = vld [vmem:[#allocation7 + $0xf0] sm:$0xff]   ;;  %v1583_v46 = vld [vmem:[#allocation7 + $0x68] sm:$0xff]   ;;  %s1691_s15 = scalar_lea.vmem %s2009_s29, 1024  ;;  %p2073_p10 = scmp.ne.s32.totalorder %s2067_s30, 0 }
  0x65   : > { %v1577_v38 = vld [vmem:[#allocation7 + $0x38] sm:$0xff]   ;;  %v1581_v44 = vld [vmem:[#allocation7 + $0x30] sm:$0xff]   ;;  %v1584_v47 = vld [vmem:[#allocation7 + $0xe8] sm:$0xff]   ;;  %p1692_p11 = scmp.ne.s32.totalorder %s2009_s29, %s1691_s15  ;;  %s1771_s16 = smov [#allocation8]  }
  0x66   : > { %487 = vmatpush1.bf16.msra.mxu0 %v1549_v15  ;;  %560 = vmatpush1.bf16.msra.mxu1 %v1550_v16  ;;  %v1578_v39 = vld [vmem:[#allocation7 + $0xb8] sm:$0xff]   ;;  %v1582_v45 = vld [vmem:[#allocation7 + $0xb0] sm:$0xff]   ;;  %v1585_v49 = vld [vmem:[#allocation7 + $0x28] sm:$0xff]   ;;  %s1695_s27 = sshll.u32 %s1771_s16, 4  ;;  %s1696_s27 = int_to_ptr.vmem [resolvable:$false] %s1695_s27 }
  0x67   : > { %488 = vmatprep.subr.bf16.mxu0 %v1551_v17  ;;  %561 = vmatprep.subr.bf16.mxu1 %v1553_v18  ;;  %v1961_v42 = vld [vmem:[%s1937_s6 + $0x18] sm:$0xff]  ;;  %v1586_v50 = vld [vmem:[#allocation7 + $0xa8] sm:$0xff]   ;;  %v1587_v51 = vld [vmem:[#allocation7 + $0x60] sm:$0xff]   ;;  %p1693_p1 = pnand %p1692_p11, %p2073_p10  ;;  %s1697_s7 = scalar_lea.vmem %s1696_s27, 2048 }
  0x68   : > { %v285_v48 = vpack.c.bf16 %v1961_v42, %v1958_v41  ;;  %v1968_v52 = vld [vmem:[%s1937_s6 + $0x20] sm:$0xff]  ;;  %v1971_v53 = vld [vmem:[%s1937_s6 + $0x28] sm:$0xff]  ;;  %v1591_v57 = vld [vmem:[#allocation7 + $0x58] sm:$0xff]   ;;  %p1698_p6 = scmp.lt.s32.totalorder %s2009_s29, %s1696_s27  ;;  %p1699_p12 = scmp.lt.s32.totalorder %s1697_s7, %s1691_s15 }
  0x69   : > { %v1588_v54 = vld [vmem:[#allocation7 + $0xe0] sm:$0xff]   ;;  %v1592_v58 = vld [vmem:[#allocation7 + $0xd8] sm:$0xff]   ;;  %v286_v59 = vpack.c.bf16 %v1971_v53, %v1968_v52  ;;  %v1595_v62 = vld [vmem:[#allocation7 + $0x50] sm:$0xff]   ;;  %p1694_p2 = pneg %p1693_p1 }
  0x6a   : > { %489 = vmatpush1.bf16.msra.mxu0 %v1555_v19  ;;  %562 = vmatpush1.bf16.msra.mxu1 %v1556_v20  ;;  %v1589_v55 = vld [vmem:[#allocation7 + $0x20] sm:$0xff]   ;;  %v1593_v60 = vld [vmem:[#allocation7 + $0x18] sm:$0xff]   ;;  %v1596_v63 = vld [vmem:[#allocation7 + $0xd0] sm:$0xff]   ;;  %p1700_p3 = por %p1699_p12, %p1698_p6 }
  0x6b   : > { %490 = vmatprep.subr.bf16.mxu0 %v1557_v21  ;;  %563 = vmatprep.subr.bf16.mxu1 %v1559_v22  ;;  %v1590_v56 = vld [vmem:[#allocation7 + $0xa0] sm:$0xff]   ;;  %v1594_v61 = vld [vmem:[#allocation7 + $0x98] sm:$0xff]   ;;  %v1978_v1 = vld [vmem:[%s1937_s6 + $0x30] sm:$0xff] }
  0x6c   : > { %v1983_v2 = vld [vmem:[%s1937_s6 + $0x38] sm:$0xff]  ;;  %v1597_v4 = vld [vmem:[#allocation7 + $0x10] sm:$0xff]   ;;  %v1599_v6 = vld [vmem:[#allocation7 + $0x48] sm:$0xff]   ;;  %p1701_p9 = pnand %p1700_p3, %p1694_p2 }
  0x6d   : > { %v287_v3 = vpack.c.bf16 %v1983_v2, %v1978_v1  ;;  %v1598_v5 = vld [vmem:[#allocation7 + $0x90] sm:$0xff]   ;;  %v1600_v7 = vld [vmem:[#allocation7 + $0xc8] sm:$0xff]   ;;  %v1604_v10 = vld [vmem:[#allocation7 + $0xc0] sm:$0xff]  }
  0x6e   : > { %491 = vmatpush1.bf16.msra.mxu0 %v1561_v23  ;;  %564 = vmatpush1.bf16.msra.mxu1 %v1562_v24  ;;  %v1601_v8 = vld [vmem:[#allocation7 + $0x8] sm:$0xff]   ;;  %v1605_v11 = vld [vmem:[#allocation7] sm:$0xff]  }
  0x6f   : > { %492 = vmatprep.subr.bf16.mxu0 %v1563_v25  ;;  %565 = vmatprep.subr.bf16.mxu1 %v1565_v26  ;;  %v1602_v9 = vld [vmem:[#allocation7 + $0x88] sm:$0xff]   ;;  %v1606_v12 = vld [vmem:[#allocation7 + $0x80] sm:$0xff]  }
  0x72   : > { %493 = vmatpush1.bf16.msra.mxu0 %v1567_v27  ;;  %566 = vmatpush1.bf16.msra.mxu1 %v1568_v28 }
  0x73   : > { %494 = vmatprep.subr.bf16.mxu0 %v1569_v29  ;;  %567 = vmatprep.subr.bf16.mxu1 %v1571_v30 }
  0x76   : > { %495 = vmatpush1.bf16.msra.mxu0 %v1573_v31  ;;  %568 = vmatpush1.bf16.msra.mxu1 %v1574_v32 }
  0x77   : > { %1371 = vmatprep.subr.bf16.mxu0 %v1575_v35  ;;  %1411 = vmatprep.subr.bf16.mxu1 %v1576_v36 }
  0x79   : > { %513 = vmatmul.mubr.bf16.vlgmr.msra.gmra.mxu0 %v284_v37  ;;  %586 = vmatmul.mubr.bf16.vlgmr.msra.gmra.mxu1 %v284_v37 }
  0x7a   : > { %522 = vmatprep.mubr.bf16.mxu0 %v1770_v0  ;;  %595 = vmatprep.mubr.bf16.mxu1 %v1770_v0 }
  0x7b   : > { %1372 = vmatpush3.bf16.msra.mxu0 %v1577_v38  ;;  %1412 = vmatpush3.bf16.msra.mxu1 %v1578_v39 }
  0x7c   : > { %1373 = vmatprep.subr.bf16.mxu0 %v1579_v40  ;;  %1413 = vmatprep.subr.bf16.mxu1 %v1580_v43 }
  0x7f   : > { %1374 = vmatpush3.bf16.msra.mxu0 %v1581_v44  ;;  %1414 = vmatpush3.bf16.msra.mxu1 %v1582_v45 }
  0x80   : > { %1375 = vmatprep.subr.bf16.mxu0 %v1583_v46  ;;  %1415 = vmatprep.subr.bf16.mxu1 %v1584_v47 }
  0x81   : > { %523 = vmatmul.mubr.bf16.gmra.mxu0 %v285_v48  ;;  %596 = vmatmul.mubr.bf16.gmra.mxu1 %v285_v48 }
  0x82   : > { %532 = vmatprep.mubr.bf16.mxu0 %v1770_v0  ;;  %605 = vmatprep.mubr.bf16.mxu1 %v1770_v0 }
  0x83   : > { %1376 = vmatpush3.bf16.msra.mxu0 %v1585_v49  ;;  %1416 = vmatpush3.bf16.msra.mxu1 %v1586_v50 }
  0x84   : > { %1377 = vmatprep.subr.bf16.mxu0 %v1587_v51  ;;  %1417 = vmatprep.subr.bf16.mxu1 %v1588_v54 }
  0x87   : > { %1378 = vmatpush3.bf16.msra.mxu0 %v1589_v55  ;;  %1418 = vmatpush3.bf16.msra.mxu1 %v1590_v56 }
  0x88   : > { %1379 = vmatprep.subr.bf16.mxu0 %v1591_v57  ;;  %1419 = vmatprep.subr.bf16.mxu1 %v1592_v58 }
  0x89   : > { %533 = vmatmul.mubr.bf16.gmra.mxu0 %v286_v59  ;;  %606 = vmatmul.mubr.bf16.gmra.mxu1 %v286_v59 }
  0x8a   : > { %542 = vmatprep.mubr.bf16.mxu0 %v1770_v0  ;;  %615 = vmatprep.mubr.bf16.mxu1 %v1770_v0  ;;  %v1603_v0 = vld [vmem:[#allocation7 + $0x40] sm:$0xff]  }
  0x8b   : > { %1380 = vmatpush3.bf16.msra.mxu0 %v1593_v60  ;;  %1420 = vmatpush3.bf16.msra.mxu1 %v1594_v61 }
  0x8c   : > { %1381 = vmatprep.subr.bf16.mxu0 %v1595_v62  ;;  %1421 = vmatprep.subr.bf16.mxu1 %v1596_v63 }
  0x8f   : > { %1382 = vmatpush3.bf16.msra.mxu0 %v1597_v4  ;;  %1422 = vmatpush3.bf16.msra.mxu1 %v1598_v5 }
  0x90   : > { %1383 = vmatprep.subr.bf16.mxu0 %v1599_v6  ;;  %1423 = vmatprep.subr.bf16.mxu1 %v1600_v7 }
  0x91   : > { %543 = vmatmul.mubr.bf16.gmra.mxu0 %v287_v3  ;;  %616 = vmatmul.mubr.bf16.gmra.mxu1 %v287_v3 }
  0x93   : > { %1384 = vmatpush3.bf16.msra.mxu0 %v1601_v8  ;;  %1424 = vmatpush3.bf16.msra.mxu1 %v1602_v9 }
  0x94   : > { %1385 = vmatprep.subr.bf16.mxu0 %v1603_v0  ;;  %1425 = vmatprep.subr.bf16.mxu1 %v1604_v10 }
  0x97   : > { %1386 = vmatpush3.bf16.msra.mxu0 %v1605_v11  ;;  %1426 = vmatpush3.bf16.msra.mxu1 %v1606_v12 }
 0x139   : > { %v514_v13 = vpop.f32.mrf.mxu0  ;;  %v587_v14 = vpop.f32.mrf.mxu1 }
 0x13a   : > { %v626_v27 = vmax.f32 %v514_v13, 0.0  ;;  %v628_v28 = vmax.f32 %v587_v14, 0.0 }
 0x13b   : > { %v516_v15 = vpop.f32.mrf.mxu0  ;;  %v589_v16 = vpop.f32.mrf.mxu1 }
 0x13c   : > { %v627_v23 = vmax.f32 %v516_v15, 0.0  ;;  %v629_v24 = vmax.f32 %v589_v16, 0.0 }
 0x13d   : > { %v518_v17 = vpop.f32.mrf.mxu0  ;;  %v591_v18 = vpop.f32.mrf.mxu1 }
 0x13e   : > { %v630_v19 = vmax.f32 %v518_v17, 0.0  ;;  %v632_v20 = vmax.f32 %v591_v18, 0.0 }
 0x13f   : > { %v520_v21 = vpop.f32.mrf.mxu0  ;;  %v593_v22 = vpop.f32.mrf.mxu1 }
 0x140   : > { %v631_v25 = vmax.f32 %v520_v21, 0.0  ;;  %v633_v26 = vmax.f32 %v593_v22, 0.0  ;;  %v658_v35 = vpack.c.bf16 %v630_v19, %v626_v27  ;;  %v660_v36 = vpack.c.bf16 %v632_v20, %v628_v28 }
 0x141   : > { %v524_v29 = vpop.f32.mrf.mxu0  ;;  %v597_v30 = vpop.f32.mrf.mxu1 }
 0x142   : > { %v659_v31 = vpack.c.bf16 %v631_v25, %v627_v23  ;;  %v661_v32 = vpack.c.bf16 %v633_v26, %v629_v24  ;;  %v634_v51 = vmax.f32 %v524_v29, 0.0  ;;  %v636_v54 = vmax.f32 %v597_v30, 0.0 }
 0x143   : > { %v526_v37 = vpop.f32.mrf.mxu0  ;;  %v599_v38 = vpop.f32.mrf.mxu1 }
 0x144   : > { %962 = vmatprep.mubr.bf16.mxu0 %v659_v31  ;;  %1027 = vmatprep.mubr.bf16.mxu1 %v661_v32  ;;  %v635_v47 = vmax.f32 %v526_v37, 0.0  ;;  %v637_v48 = vmax.f32 %v599_v38, 0.0 }
 0x145   : > { %v528_v39 = vpop.f32.mrf.mxu0  ;;  %v601_v40 = vpop.f32.mrf.mxu1  ;;  %963 = vmatmul.mubr.bf16.vlgmr.msra.gmra.mxu0 %v658_v35  ;;  %1028 = vmatmul.mubr.bf16.vlgmr.msra.gmra.mxu1 %v660_v36 }
 0x146   : > { %v638_v43 = vmax.f32 %v528_v39, 0.0  ;;  %v640_v44 = vmax.f32 %v601_v40, 0.0 }
 0x147   : > { %v530_v45 = vpop.f32.mrf.mxu0  ;;  %v603_v46 = vpop.f32.mrf.mxu1 }
 0x148   : > { %v639_v49 = vmax.f32 %v530_v45, 0.0  ;;  %v641_v50 = vmax.f32 %v603_v46, 0.0  ;;  %v662_v59 = vpack.c.bf16 %v638_v43, %v634_v51  ;;  %v664_v60 = vpack.c.bf16 %v640_v44, %v636_v54 }
 0x149   : > { %v534_v55 = vpop.f32.mrf.mxu0  ;;  %v607_v56 = vpop.f32.mrf.mxu1 }
 0x14a   : > { %v663_v57 = vpack.c.bf16 %v639_v49, %v635_v47  ;;  %v665_v58 = vpack.c.bf16 %v641_v50, %v637_v48  ;;  %v642_v11 = vmax.f32 %v534_v55, 0.0  ;;  %v644_v12 = vmax.f32 %v607_v56, 0.0 }
 0x14b   : > { %v536_v61 = vpop.f32.mrf.mxu0  ;;  %v609_v62 = vpop.f32.mrf.mxu1 }
 0x14c   : > { %970 = vmatprep.mubr.bf16.mxu0 %v663_v57  ;;  %1035 = vmatprep.mubr.bf16.mxu1 %v665_v58  ;;  %v643_v8 = vmax.f32 %v536_v61, 0.0  ;;  %v645_v9 = vmax.f32 %v609_v62, 0.0 }
 0x14d   : > { %v538_v63 = vpop.f32.mrf.mxu0  ;;  %v611_v3 = vpop.f32.mrf.mxu1  ;;  %971 = vmatmul.mubr.bf16.gmra.mxu0 %v662_v59  ;;  %1036 = vmatmul.mubr.bf16.gmra.mxu1 %v664_v60 }
 0x14e   : > { %v646_v4 = vmax.f32 %v538_v63, 0.0  ;;  %v648_v5 = vmax.f32 %v611_v3, 0.0 }
 0x14f   : > { %v540_v6 = vpop.f32.mrf.mxu0  ;;  %v613_v7 = vpop.f32.mrf.mxu1 }
 0x150   : > { %v647_v0 = vmax.f32 %v540_v6, 0.0  ;;  %v649_v10 = vmax.f32 %v613_v7, 0.0  ;;  %v666_v17 = vpack.c.bf16 %v646_v4, %v642_v11  ;;  %v668_v18 = vpack.c.bf16 %v648_v5, %v644_v12 }
 0x151   : > { %v544_v13 = vpop.f32.mrf.mxu0  ;;  %v617_v14 = vpop.f32.mrf.mxu1 }
 0x152   : > { %v667_v15 = vpack.c.bf16 %v647_v0, %v643_v8  ;;  %v669_v16 = vpack.c.bf16 %v649_v10, %v645_v9  ;;  %v650_v31 = vmax.f32 %v544_v13, 0.0  ;;  %v652_v32 = vmax.f32 %v617_v14, 0.0 }
 0x153   : > { %v546_v19 = vpop.f32.mrf.mxu0  ;;  %v619_v20 = vpop.f32.mrf.mxu1 }
 0x154   : > { %978 = vmatprep.mubr.bf16.mxu0 %v667_v15  ;;  %1043 = vmatprep.mubr.bf16.mxu1 %v669_v16  ;;  %v651_v27 = vmax.f32 %v546_v19, 0.0  ;;  %v653_v28 = vmax.f32 %v619_v20, 0.0 }
 0x155   : > { %v548_v21 = vpop.f32.mrf.mxu0  ;;  %v621_v22 = vpop.f32.mrf.mxu1  ;;  %979 = vmatmul.mubr.bf16.gmra.mxu0 %v666_v17  ;;  %1044 = vmatmul.mubr.bf16.gmra.mxu1 %v668_v18 }
 0x156   : > { %v654_v23 = vmax.f32 %v548_v21, 0.0  ;;  %v656_v24 = vmax.f32 %v621_v22, 0.0 }
 0x157   : > { %v550_v25 = vpop.f32.mrf.mxu0  ;;  %v623_v26 = vpop.f32.mrf.mxu1 }
 0x158   : > { %v655_v29 = vmax.f32 %v550_v25, 0.0  ;;  %v657_v30 = vmax.f32 %v623_v26, 0.0  ;;  %v670_v37 = vpack.c.bf16 %v654_v23, %v650_v31  ;;  %v672_v38 = vpack.c.bf16 %v656_v24, %v652_v32 }
 0x15a   : > { %v671_v35 = vpack.c.bf16 %v655_v29, %v651_v27  ;;  %v673_v36 = vpack.c.bf16 %v657_v30, %v653_v28 }
 0x15c   : > { %986 = vmatprep.mubr.bf16.mxu0 %v671_v35  ;;  %1051 = vmatprep.mubr.bf16.mxu1 %v673_v36 }
 0x15d   : > { %987 = vmatmul.mubr.bf16.gmra.mxu0 %v670_v37  ;;  %1052 = vmatmul.mubr.bf16.gmra.mxu1 %v672_v38 }
 0x205   : > { %v1387_v39 = vpop.f32.mrf.mxu0  ;;  %v1427_v40 = vpop.f32.mrf.mxu1 }
 0x207   : > { %v1388_v43 = vpop.f32.mrf.mxu0  ;;  %v1428_v44 = vpop.f32.mrf.mxu1 }
 0x208   : > { %v1389_v49 = vadd.f32 %v1388_v43, %v1387_v39  ;;  %v1429_v50 = vadd.f32 %v1428_v44, %v1427_v40 }
 0x209   : > { %v1390_v45 = vpop.f32.mrf.mxu0  ;;  %v1430_v46 = vpop.f32.mrf.mxu1 }
 0x20a   : > { %v1030_v60 = vadd.f32 %v1429_v50, %v1389_v49 }
 0x20b   : > { %v1391_v47 = vpop.f32.mrf.mxu0  ;;  %v1431_v48 = vpop.f32.mrf.mxu1 }
 0x20c   : > { %v1392_v51 = vadd.f32 %v1391_v47, %v1390_v45  ;;  %v1432_v54 = vadd.f32 %v1431_v48, %v1430_v46  ;;  %v1060_v8 = vadd.f32 %v1030_v60, %v1950_v33 }
 0x20d   : > { %v1393_v55 = vpop.f32.mrf.mxu0  ;;  %v1433_v56 = vpop.f32.mrf.mxu1 }
 0x20e   : > { %v1033_v57 = vadd.f32 %v1432_v54, %v1392_v51 }
 0x20f   : > { %v1394_v58 = vpop.f32.mrf.mxu0  ;;  %v1434_v59 = vpop.f32.mrf.mxu1 }
 0x210   : > { %v1395_v61 = vadd.f32 %v1394_v58, %v1393_v55  ;;  %v1435_v62 = vadd.f32 %v1434_v59, %v1433_v56  ;;  %v1061_v4 = vadd.f32 %v1033_v57, %v1953_v34 }
 0x211   : > { %v1396_v63 = vpop.f32.mrf.mxu0  ;;  %v1436_v3 = vpop.f32.mrf.mxu1 }
 0x212   : > { %v1038_v5 = vadd.f32 %v1435_v62, %v1395_v61  ;;  %v1068_v13 = vadd.f32 %v1061_v4, %v1060_v8 }
 0x213   : > { %v1397_v6 = vpop.f32.mrf.mxu0  ;;  %v1437_v7 = vpop.f32.mrf.mxu1 }
 0x214   : > { %v1062_v9 = vadd.f32 %v1038_v5, %v1958_v41  ;;  %v1398_v0 = vadd.f32 %v1397_v6, %v1396_v63  ;;  %v1438_v10 = vadd.f32 %v1437_v7, %v1436_v3 }
 0x215   : > { %v1399_v11 = vpop.f32.mrf.mxu0  ;;  %v1439_v12 = vpop.f32.mrf.mxu1 }
 0x216   : > { %v1041_v14 = vadd.f32 %v1438_v10, %v1398_v0  ;;  %v1069_v17 = vadd.f32 %v1068_v13, %v1062_v9 }
 0x217   : > { %v1400_v15 = vpop.f32.mrf.mxu0  ;;  %v1440_v16 = vpop.f32.mrf.mxu1 }
 0x218   : > { %v1063_v18 = vadd.f32 %v1041_v14, %v1961_v42  ;;  %v1401_v41 = vadd.f32 %v1400_v15, %v1399_v11  ;;  %v1441_v25 = vadd.f32 %v1440_v16, %v1439_v12 }
 0x219   : > { %v1402_v19 = vpop.f32.mrf.mxu0  ;;  %v1442_v34 = vpop.f32.mrf.mxu1 }
 0x21a   : > { %v1070_v20 = vadd.f32 %v1069_v17, %v1063_v18  ;;  %v1046_v42 = vadd.f32 %v1441_v25, %v1401_v41 }
 0x21b   : > { %v1403_v21 = vpop.f32.mrf.mxu0  ;;  %v1443_v22 = vpop.f32.mrf.mxu1 }
 0x21c   : > { %v1071_v23 = vrot.slane %v1070_v20, 4  ;;  %v1404_v33 = vadd.f32 %v1403_v21, %v1402_v19  ;;  %v1444_v24 = vadd.f32 %v1443_v22, %v1442_v34  ;;  %v1064_v49 = vadd.f32 %v1046_v42, %v1968_v52  ;;  %v1359_v42 = vld [vmem:[%s2055_s3] ss:$0 sm:$0xff] }
 0x21d   : > { %v1405_v26 = vpop.f32.mrf.mxu0  ;;  %v1445_v27 = vpop.f32.mrf.mxu1 }
 0x21e   : > { %v1072_v28 = vadd.f32 %v1071_v23, %v1070_v20  ;;  %v1049_v29 = vadd.f32 %v1444_v24, %v1404_v33 }
 0x21f   : > { %v1406_v30 = vpop.f32.mrf.mxu0  ;;  %v1446_v31 = vpop.f32.mrf.mxu1 }
 0x220   : > { %v1073_v32 = vrot.slane %v1072_v28, 2  ;;  %v1407_v35 = vadd.f32 %v1406_v30, %v1405_v26  ;;  %v1447_v36 = vadd.f32 %v1446_v31, %v1445_v27  ;;  %v1065_v43 = vadd.f32 %v1049_v29, %v1971_v53 }
 0x221   : > { %v1408_v37 = vpop.f32.mrf.mxu0  ;;  %v1448_v38 = vpop.f32.mrf.mxu1 }
 0x222   : > { %v1074_v39 = vadd.f32 %v1073_v32, %v1072_v28  ;;  %v1054_v40 = vadd.f32 %v1447_v36, %v1407_v35  ;;  %v1077_v55 = vadd.f32 %v1065_v43, %v1064_v49 }
 0x223   : > { %v1409_v44 = vpop.f32.mrf.mxu0  ;;  %v1449_v45 = vpop.f32.mrf.mxu1 }
 0x224   : > { %v1075_v46 = vrot.slane %v1074_v39, 1  ;;  %v1410_v47 = vadd.f32 %v1409_v44, %v1408_v37  ;;  %v1450_v48 = vadd.f32 %v1449_v45, %v1448_v38  ;;  %v1066_v50 = vadd.f32 %v1054_v40, %v1978_v1  ;;  %v1360_v44 = vld [vmem:[%s2056_s4] ss:$0 sm:$0xff] }
 0x226   : > { %v1076_v51 = vadd.f32 %v1075_v46, %v1074_v39  ;;  %v1057_v54 = vadd.f32 %v1450_v48, %v1410_v47  ;;  %v1078_v58 = vadd.f32 %v1077_v55, %v1066_v50 }
 0x228   : > { %v1086_v56 = vmul.f32 0.03125, %v1076_v51  ;;  %v1067_v57 = vadd.f32 %v1057_v54, %v1983_v2 }
 0x22a   : > { %v1088_v59 = vsub.f32 %v1060_v8, %v1086_v56  ;;  %v1089_v60 = vsub.f32 %v1061_v4, %v1086_v56  ;;  %v1090_v61 = vsub.f32 %v1062_v9, %v1086_v56  ;;  %v1079_v53 = vadd.f32 %v1078_v58, %v1067_v57 }
 0x22b   : > { %v1091_v62 = vsub.f32 %v1063_v18, %v1086_v56 }
 0x22c   : > { %v1096_v63 = vmul.f32 %v1088_v59, %v1088_v59  ;;  %v1097_v3 = vmul.f32 %v1089_v60, %v1089_v60  ;;  %v1080_v5 = vrot.slane %v1079_v53, 4  ;;  %v1098_v6 = vmul.f32 %v1090_v61, %v1090_v61 }
 0x22d   : > { %v1099_v0 = vmul.f32 %v1091_v62, %v1091_v62 }
 0x22e   : > { %v1104_v7 = vadd.f32 %v1097_v3, %v1096_v63  ;;  %v1081_v52 = vadd.f32 %v1080_v5, %v1079_v53 }
 0x230   : > { %v1105_v1 = vadd.f32 %v1104_v7, %v1098_v6  ;;  %v1082_v10 = vrot.slane %v1081_v52, 2 }
 0x232   : > { %v1106_v11 = vadd.f32 %v1105_v1, %v1099_v0  ;;  %v1083_v12 = vadd.f32 %v1082_v10, %v1081_v52 }
 0x234   : > { %v1107_v13 = vrot.slane %v1106_v11, 4  ;;  %v1084_v14 = vrot.slane %v1083_v12, 1 }
 0x236   : > { %v1108_v2 = vadd.f32 %v1107_v13, %v1106_v11  ;;  %v1085_v15 = vadd.f32 %v1084_v14, %v1083_v12 }
 0x238   : > { %v1109_v8 = vrot.slane %v1108_v2, 2  ;;  %v1087_v4 = vmul.f32 0.03125, %v1085_v15 }
 0x23a   : > { %v1110_v9 = vadd.f32 %v1109_v8, %v1108_v2  ;;  %v1092_v16 = vsub.f32 %v1064_v49, %v1087_v4  ;;  %v1093_v17 = vsub.f32 %v1065_v43, %v1087_v4  ;;  %v1094_v18 = vsub.f32 %v1066_v50, %v1087_v4 }
 0x23b   : > { %v1095_v34 = vsub.f32 %v1067_v57, %v1087_v4 }
 0x23c   : > { %v1111_v19 = vrot.slane %v1110_v9, 1  ;;  %v1100_v20 = vmul.f32 %v1092_v16, %v1092_v16  ;;  %v1101_v21 = vmul.f32 %v1093_v17, %v1093_v17  ;;  %v1102_v23 = vmul.f32 %v1094_v18, %v1094_v18 }
 0x23d   : > { %v1103_v41 = vmul.f32 %v1095_v34, %v1095_v34 }
 0x23e   : > { %v1112_v22 = vadd.f32 %v1111_v19, %v1110_v9  ;;  %v1113_v33 = vadd.f32 %v1101_v21, %v1100_v20 }
 0x240   : > { %v1122_v24 = vmul.f32 0.03125, %v1112_v22  ;;  %v1114_v25 = vadd.f32 %v1113_v33, %v1102_v23 }
 0x242   : > { %v1124_v26 = vadd.f32 1e-05, %v1122_v24  ;;  %v1115_v27 = vadd.f32 %v1114_v25, %v1103_v41 }
 0x244   : > { %1607 = vrsqrt.f32 %v1124_v26  ;;  %v1116_v28 = vrot.slane %v1115_v27, 4 }
 0x246   : > { %v1117_v29 = vadd.f32 %v1116_v28, %v1115_v27 }
 0x248   : > { %v1118_v30 = vrot.slane %v1117_v29, 2 }
 0x24a   : > { %v1119_v31 = vadd.f32 %v1118_v30, %v1117_v29 }
 0x24c   : > { %v1120_v32 = vrot.slane %v1119_v31, 1 }
 0x24e   : > { %v1121_v35 = vadd.f32 %v1120_v32, %v1119_v31 }
 0x250   : > { %v1123_v37 = vmul.f32 0.03125, %v1121_v35 }
 0x251   : > { %v1608_v36 = vpop.eup %1607 }
 0x252   : > { %v1130_v38 = vmul.f32 %v1608_v36, %v1088_v59  ;;  %v1131_v39 = vmul.f32 %v1608_v36, %v1089_v60  ;;  %v1132_v40 = vmul.f32 %v1608_v36, %v1090_v61  ;;  %v1133_v43 = vmul.f32 %v1608_v36, %v1091_v62 }
 0x253   : > { %v1125_v45 = vadd.f32 1e-05, %v1123_v37 }
 0x254   : > { %v1144_v46 = vmul.f32 %v1359_v42, %v1130_v38  ;;  %v1145_v47 = vmul.f32 %v1359_v42, %v1131_v39  ;;  %v1146_v48 = vmul.f32 %v1359_v42, %v1132_v40  ;;  %v1147_v49 = vmul.f32 %v1359_v42, %v1133_v43 }
 0x255   : > { %1609 = vrsqrt.f32 %v1125_v45 }
 0x256   : > { %v1158_v50 = vadd.f32 %v1360_v44, %v1144_v46  ;;  %v1159_v51 = vadd.f32 %v1360_v44, %v1145_v47  ;;  %v1160_v54 = vadd.f32 %v1360_v44, %v1146_v48  ;;  %v1161_v55 = vadd.f32 %v1360_v44, %v1147_v49 }
 0x258   : > { %1166 = vst [vmem:[%s272_s13] sm:$0xff] %v1158_v50  ;;  %1167 = vst [vmem:[%s272_s13 + $0x8] sm:$0xff] %v1159_v51 }
 0x259   : > { %1168 = vst [vmem:[%s272_s13 + $0x10] sm:$0xff] %v1160_v54  ;;  %1169 = vst [vmem:[%s272_s13 + $0x18] sm:$0xff] %v1161_v55 }
 0x262   : > { %v1610_v56 = vpop.eup %1609 }
 0x263   : > { %v1134_v57 = vmul.f32 %v1610_v56, %v1092_v16  ;;  %v1135_v58 = vmul.f32 %v1610_v56, %v1093_v17  ;;  %v1136_v59 = vmul.f32 %v1610_v56, %v1094_v18  ;;  %v1137_v60 = vmul.f32 %v1610_v56, %v1095_v34 }
 0x265   : > { %v1148_v61 = vmul.f32 %v1359_v42, %v1134_v57  ;;  %v1149_v53 = vmul.f32 %v1359_v42, %v1135_v58  ;;  %v1150_v62 = vmul.f32 %v1359_v42, %v1136_v59  ;;  %v1151_v63 = vmul.f32 %v1359_v42, %v1137_v60 }
 0x267   : > { %v1162_v3 = vadd.f32 %v1360_v44, %v1148_v61  ;;  %v1163_v5 = vadd.f32 %v1360_v44, %v1149_v53  ;;  %v1164_v6 = vadd.f32 %v1360_v44, %v1150_v62  ;;  %v1165_v7 = vadd.f32 %v1360_v44, %v1151_v63 }
 0x269   : > { %1170 = vst [vmem:[%s272_s13 + $0x20] sm:$0xff] %v1162_v3  ;;  %1171 = vst [vmem:[%s272_s13 + $0x28] sm:$0xff] %v1163_v5 }
 0x26a   : > { %1172 = vst [vmem:[%s272_s13 + $0x30] sm:$0xff] %v1164_v6  ;;  %1173 = vst [vmem:[%s272_s13 + $0x38] sm:$0xff] %v1165_v7 }
 0x26b   : > { %1704 = shalt.err (!%p1701_p9)
}
 0x26c   : > { %s1705_s6 = scalar_lea.hbm %s2007_s11, 1024  ;;  %s1709_s10 = scalar_lea.hbm %s2057_s5, 2048 }
 0x26d   : > { %p1706_p13 = scmp.ne.s32.totalorder %s2007_s11, %s1705_s6  ;;  %p1710_p4 = scmp.lt.s32.totalorder %s2007_s11, %s2057_s5 }
 0x26e   : > { %p1711_p8 = scmp.lt.s32.totalorder %s1709_s10, %s1705_s6 }
 0x26f   : > { %p1707_p5 = pnand %p1706_p13, %p2073_p10 }
 0x270   : > { %p1712_p7 = por %p1711_p8, %p1710_p4 }
 0x271   : > { %p1708_p0 = pneg %p1707_p5 }
 0x273   : > { %p1713_p11 = pnand %p1712_p7, %p1708_p0 }
 0x275   : > { %1716 = shalt.err (!%p1713_p11)
}
 0x276   : > { %s1772_s14 = smov 128   ;;  %s1773_s8 = smov 8  }
 0x277   : > { %1461 = dma.vmem_to_hbm [thread:$0]  (%p2073_p10), %s2009_s29, 1024, %s2007_s11, %s1175_s22, %s1772_s14, %s1772_s14, %s1773_s8  }
 0x278 PF: > { %s1204_s9 = sand.u32 1, %s1747_s18   ;;  %p2074_p1 = scmp.ne.s32.totalorder %s2063_s25, 0 }
 0x279   : > { %p2075_p2 = scmp.ge.s32.totalorder %s1759_s21, 2  ;;  %s1205_s15 = scalar_lea.sflag [#allocation4], %s1204_s9 }
 0x27b   : > { %p1475_p6 = pnand %p2075_p2, %p2074_p1 }
 0x27d   : > { %p1476_p12 = pneg %p1475_p6 }
 0x27f   : > { %1742 = dma.done.wait (%p1476_p12), %s1205_s15, 1024  }
 0x280   : > { %1744 = vsyncadd (%p1476_p12), %s1205_s15, 4294966272  ;;  %p19_p3 = scmp.ge.s32.totalorder %s1876_s17, 4   ;;  %s2076_s18 = smov %s1751_s19 }
 0x281   : > { %s2077_s19 = smov %s1755_s20  ;;  %s2078_s20 = smov %s1885_s28 }
 0x282   : > { %s2079_s21 = smov %s1876_s17  ;;  %21 = sbr.rel (!%p19_p3) target bundleno = 6 (0x6), region = 93 }
 0x287   :  { %1210 = vsyncpa [#allocation3], 1 }
 0x288   :  { %1212 = vsyncpa [#allocation3 + $0x1], 1 }
 0x289   :  { %1213 = vsyncpa [#allocation6], 1 }
 0x28a   :  { %1214 = vsyncpa [#allocation4], 1 }
 0x28b   :  { %1216 = vsyncpa [#allocation4 + $0x1], 1 }

// kernel: tpu_custom_call.1
= control target key start
LH: loop header
LB: loop body
LE: loop exit
PB: predicated region body
PF: predicated region fallthrough
CT: control target
= control target key end

     0   :  { %10 = vsyncpa [#allocation3], 0  ;;  %s2052_s0 = inlined_call_operand.hbm [shape: f32[4,32,128], index: 0, kind: input, shape index: {}]   ;;  %s2053_s1 = inlined_call_operand.hbm [shape: bf16[128,512], index: 1, kind: input, shape index: {}]   ;;  %s2054_s2 = inlined_call_operand.hbm [shape: bf16[512,128], index: 2, kind: input, shape index: {}]   ;;  %s2055_s3 = inlined_call_operand.vmem [shape: f32[1,128], index: 3, kind: input, shape index: {}]   ;;  %s2056_s4 = inlined_call_operand.vmem [shape: f32[1,128], index: 4, kind: input, shape index: {}]   ;;  %s2057_s5 = inlined_call_operand.hbm [shape: f32[4,32,128], index: 5, kind: output, shape index: {}]  }
   0x1   :  { %12 = vsyncpa [#allocation3 + $0x1], 0 }
   0x2   :  { %13 = vsyncpa [#allocation6], 0 }
   0x3   :  { %14 = vsyncpa [#allocation4], 0 }
   0x4   :  { %16 = vsyncpa [#allocation4 + $0x1], 0  ;;  %s1804_s18 = smov 0   ;;  %s1806_s19 = smov 0  }
   0x5   :  { %s1808_s20 = smov 0   ;;  %s1810_s21 = smov 0  }
   0x6 LB: > { %s1825_s22 = sadd.s32 4294967295, %s1759_s21   ;;  %s1281_s23 = sadd.s32 4294967294, %s1759_s21   ;;  %s1759_s21 = sphi %s1810_s21, %s2079_s21   ;;  %s1755_s20 = sphi %s1808_s20, %s2078_s20   ;;  %s1751_s19 = sphi %s1806_s19, %s2077_s19   ;;  %s1747_s18 = sphi %s1804_s18, %s2076_s18  }
   0x7   : > { %p42_p0 = scmp.ne.s32.totalorder %s1751_s19, %s1747_s18  ;;  %p2058_p1 = scmp.eq.s32.totalorder %s1825_s22, 0 }
   0x8   : > { %p156_p3 = scmp.eq.s32.totalorder %s1281_s23, 1  ;;  %p1282_p5 = scmp.ge.s32.totalorder %s1759_s21, 1 }
   0x9   : > { %p1834_p4 = por %p2058_p1, %p42_p0  ;;  %p163_p7 = scmp.lt.s32.totalorder %s1759_s21, 3 }
   0xa   : > { %p1839_p6 = por %p156_p3, %p42_p0  ;;  %s1761_s27 = smov [#allocation5]  }
   0xb   : > { %s2062_s24 = scalar_select %p1834_p4, 1, 0 }
   0xc   : > { %s2063_s25 = scalar_select %p1839_p6, 1, 0 }
   0xd   : > { %p1844_p8 = pnand %p1282_p5, %p163_p7  ;;  %s175_s28 = sshll.u32 %s1761_s27, 4  ;;  %s176_s28 = int_to_ptr.vmem [resolvable:$true] %s175_s28 }
   0xe   : > { %s1762_s30 = smov [#allocation7]   ;;  %s1622_s7 = scalar_lea.vmem %s176_s28, 4096 }
   0xf   : > { %s2064_s26 = scalar_select %p1844_p8, 1, 0 }
  0x10   : > { %p1463_p9 = pneg %p1844_p8  ;;  %s188_s6 = sshll.u32 %s1762_s30, 4  ;;  %s189_s6 = int_to_ptr.vmem [resolvable:$true] %s188_s6 }
  0x11   : > { %p1623_p13 = scmp.ne.s32.totalorder %s176_s28, %s1622_s7  ;;  %p1630_p5 = scmp.lt.s32.totalorder %s176_s28, %s176_s28 }
  0x12   : > { %p1853_p11 = pnand %p1463_p9, %p2058_p1  ;;  %p1631_p7 = scmp.lt.s32.totalorder %s1622_s7, %s1622_s7 }
  0x14   : > { %p1613_p12 = pneg %p1853_p11  ;;  %p1632_p10 = por %p1631_p7, %p1630_p5 }
  0x16   : > { %p1625_p0 = pnand %p1623_p13, %p1613_p12 }
  0x18   : > { %p1626_p3 = pneg %p1625_p0 }
  0x1a   : > { %p1633_p9 = pnand %p1632_p10, %p1626_p3 }
  0x1c   : > { %1636 = shalt.err (!%p1633_p9)
}
  0x1d   : > { %s1763_s8 = smov 256   ;;  %s1764_s9 = smov 16  }
  0x1e   : > { %1466 = dma.hbm_to_vmem [thread:$0]  (!%p1853_p11), %s2053_s1, 4096, %s176_s28, [#allocation6], %s1763_s8, %s1763_s8, %s1764_s9  }
  0x1f   : > { %s1648_s12 = scalar_lea.vmem %s189_s6, 4096  ;;  %p1656_p2 = scmp.lt.s32.totalorder %s189_s6, %s189_s6 }
  0x20   : > { %p1649_p1 = scmp.ne.s32.totalorder %s189_s6, %s1648_s12  ;;  %p1657_p6 = scmp.lt.s32.totalorder %s1648_s12, %s1648_s12 }
  0x22   : > { %p1651_p13 = pnand %p1649_p1, %p1613_p12  ;;  %p1658_p5 = por %p1657_p6, %p1656_p2 }
  0x24   : > { %p1652_p0 = pneg %p1651_p13 }
  0x26   : > { %p1659_p10 = pnand %p1658_p5, %p1652_p0 }
  0x28   : > { %1662 = shalt.err (!%p1659_p10)
}
  0x29   : > { %s1765_s13 = smov 64   ;;  %s1766_s14 = smov 4  }
  0x2a   : > { %1469 = dma.hbm_to_vmem [thread:$0]  (!%p1853_p11), %s2054_s2, 4096, %s189_s6, [#allocation6], %s1765_s13, %s1765_s13, %s1766_s14  }
  0x2b   : > { %s1876_s17 = sadd.s32 1, %s1759_s21   ;;  %s29_s27 = sadd.s32 1, %s1755_s20 }
  0x2c   : > { %s26_s23 = ssub.s32 %s1759_s21, %s1876_s17  ;;  %p36_p2 = scmp.ne.s32.totalorder %s1755_s20, %s1751_s19 }
  0x2d   : > { %p27_p1 = scmp.eq.s32.totalorder %s26_s23, 0  ;;  %p37_p6 = scmp.eq.s32.totalorder %s1759_s21, 0 }
  0x2e   : > { %p2066_p3 = scmp.eq.s32.totalorder %s1825_s22, 1  ;;  %p1480_p9 = scmp.lt.s32.totalorder %s1759_s21, 2 }
  0x2f   : > { %s1885_s28 = scalar_select %p27_p1, %s1755_s20, %s29_s27  }
  0x30   : > { %p38_p12 = por %p37_p6, %p36_p2  ;;  %p1889_p7 = por %p2066_p3, %p36_p2 }
  0x31   : > { %s208_s29 = sand.u32 1, %s1755_s20   ;;  %s1368_s6 = sshll.u32 %s1759_s21, 10 }
  0x32   : > { %s2067_s30 = scalar_select %p1889_p7, 1, 0 }
  0x33   : > { %s1286_s7 = sshll.u32 %s208_s29, 6  ;;  %s1899_s10 = scalar_lea.hbm %s2052_s0, %s1368_s6 }
  0x34   : > { %s212_s11 = scalar_lea.vmem [#allocation2], %s1286_s7  ;;  %p1903_p11 = pnand %p1480_p9, %p38_p12 }
  0x35   : > { %s220_s12 = sshll.u32 %s212_s11, 4  ;;  %s1907_s14 = scalar_lea.sflag [#allocation3], %s208_s29  ;;  %s1901_s12 = int_to_ptr.vmem [resolvable:$true] %s220_s12 }
  0x36   : > { %s1663_s15 = scalar_lea.hbm %s1899_s10, 1024  ;;  %p1665_p0 = pneg %p1903_p11 }
  0x37   : > { %p1664_p13 = scmp.ne.s32.totalorder %s1899_s10, %s1663_s15  ;;  %s1668_s27 = scalar_lea.hbm %s2052_s0, 2048 }
  0x38   : > { %p1669_p1 = scmp.lt.s32.totalorder %s1899_s10, %s2052_s0  ;;  %p1670_p2 = scmp.lt.s32.totalorder %s1668_s27, %s1663_s15 }
  0x39   : > { %p1666_p5 = pnand %p1665_p0, %p1664_p13 }
  0x3a   : > { %p1671_p6 = por %p1670_p2, %p1669_p1 }
  0x3b   : > { %p1667_p10 = pneg %p1666_p5 }
  0x3d   : > { %p1672_p12 = pnand %p1671_p6, %p1667_p10 }
  0x3f   : > { %1675 = shalt.err (!%p1672_p12)
}
  0x40   : > { %s1676_s29 = scalar_lea.vmem %s1901_s12, 1024  ;;  %s1767_s8 = smov [#allocation2]  }
  0x41   : > { %p1677_p3 = scmp.ne.s32.totalorder %s1901_s12, %s1676_s29  ;;  %s1681_s9 = sshll.u32 %s1767_s8, 4  ;;  %s1682_s9 = int_to_ptr.vmem [resolvable:$false] %s1681_s9 }
  0x42   : > { %s1683_s11 = scalar_lea.vmem %s1682_s9, 2048  ;;  %p1684_p5 = scmp.lt.s32.totalorder %s1901_s12, %s1682_s9 }
  0x43   : > { %p1679_p9 = pnand %p1677_p3, %p1665_p0  ;;  %p1685_p7 = scmp.lt.s32.totalorder %s1683_s11, %s1676_s29 }
  0x45   : > { %p1680_p13 = pneg %p1679_p9  ;;  %p1686_p4 = por %p1685_p7, %p1684_p5 }
  0x47   : > { %p1687_p8 = pnand %p1686_p4, %p1680_p13 }
  0x49   : > { %1690 = shalt.err (!%p1687_p8)
}
  0x4a   : > { %s1768_s15 = smov 128   ;;  %s1769_s16 = smov 8  }
  0x4b   : > { %1473 = dma.hbm_to_vmem [thread:$0]  (!%p1903_p11), %s1899_s10, 1024, %s1901_s12, %s1907_s14, %s1768_s15, %s1768_s15, %s1769_s16  }
  0x4c   : > { %p2069_p0 = scmp.ne.s32.totalorder %s2064_s26, 0 }
  0x4d   : > { %s1931_s23 = sand.u32 (!%p2069_p0), 1, %s1751_s19   ;;  %p2070_p4 = scmp.ne.s32.totalorder (!%p2069_p0), %s2062_s24, 0 }
  0x4e   : > { %232 = sbr.rel (%p2069_p0) target bundleno = 632 (0x278), region = 40  ;;  %s1291_s27 = sshll.u32 (!%p2069_p0), %s1931_s23, 6 }
  0x4f   : > { %s235_s7 = scalar_lea.sflag (!%p2069_p0), [#allocation3], %s1931_s23  ;;  %s1937_s6 = scalar_lea.vmem (!%p2069_p0), [#allocation2], %s1291_s27 }
  0x53   : > { %1734 = dma.done.wait (%p2070_p4), %s235_s7, 1024  }
  0x54   : > { %1736 = vsyncadd (%p2070_p4), %s235_s7, 4294966272  ;;  %p2071_p8 = scmp.eq.s32.totalorder %s1825_s22, 0 }
  0x56   : > { %1738 = dma.done.wait (%p2071_p8), [#allocation6], 8192   ;;  %p2072_p7 = pmov %p2071_p8 }
  0x57   : > { %v1770_v0 = vmov 0   ;;  %v1527_v1 = vld [vmem:[#allocation5 + $0xe4] ss:$16 sps:$4 sm:$0xff]   ;;  %v1529_v2 = vld [vmem:[#allocation5 + $0xec] ss:$16 sps:$4 sm:$0xff]   ;;  %s272_s13 = scalar_lea.vmem [#allocation8], %s1291_s27 }
  0x58   : > { %1740 = vsyncadd (%p2072_p7), [#allocation6], 4294959104  ;;  %512 = vmatprep.mubr.bf16.mxu0 %v1770_v0  ;;  %585 = vmatprep.mubr.bf16.mxu1 %v1770_v0  ;;  %v1531_v3 = vld [vmem:[#allocation5 + $0xe0] ss:$16 sps:$4 sm:$0xff]   ;;  %v1532_v4 = vld [vmem:[#allocation5 + $0xe8] ss:$16 sps:$4 sm:$0xff]  }
  0x59   : > { %480 = vmatprep.subr.bf16.mxu0 %v1527_v1  ;;  %553 = vmatprep.subr.bf16.mxu1 %v1529_v2  ;;  %v1533_v5 = vld [vmem:[#allocation5 + $0xc4] ss:$16 sps:$4 sm:$0xff]   ;;  %v1535_v6 = vld [vmem:[#allocation5 + $0xcc] ss:$16 sps:$4 sm:$0xff]   ;;  %v1537_v7 = vld [vmem:[#allocation5 + $0xc0] ss:$16 sps:$4 sm:$0xff]  }
  0x5a   : > { %481 = vmatpush1.bf16.msra.mxu0 %v1531_v3  ;;  %554 = vmatpush1.bf16.msra.mxu1 %v1532_v4  ;;  %v1538_v8 = vld [vmem:[#allocation5 + $0xc8] ss:$16 sps:$4 sm:$0xff]   ;;  %v1539_v9 = vld [vmem:[#allocation5 + $0xa4] ss:$16 sps:$4 sm:$0xff]   ;;  %v1541_v10 = vld [vmem:[#allocation5 + $0xac] ss:$16 sps:$4 sm:$0xff]  }
  0x5b   : > { %482 = vmatprep.subr.bf16.mxu0 %v1533_v5  ;;  %555 = vmatprep.subr.bf16.mxu1 %v1535_v6  ;;  %v1543_v11 = vld [vmem:[#allocation5 + $0xa0] ss:$16 sps:$4 sm:$0xff]   ;;  %v1544_v12 = vld [vmem:[#allocation5 + $0xa8] ss:$16 sps:$4 sm:$0xff]   ;;  %v1545_v13 = vld [vmem:[#allocation5 + $0x84] ss:$16 sps:$4 sm:$0xff]  }
  0x5c   : > { %v1547_v14 = vld [vmem:[#allocation5 + $0x8c] ss:$16 sps:$4 sm:$0xff]   ;;  %v1549_v15 = vld [vmem:[#allocation5 + $0x80] ss:$16 sps:$4 sm:$0xff]   ;;  %v1550_v16 = vld [vmem:[#allocation5 + $0x88] ss:$16 sps:$4 sm:$0xff]  }
  0x5d   : > { %v1551_v17 = vld [vmem:[#allocation5 + $0x64] ss:$16 sps:$4 sm:$0xff]   ;;  %v1553_v18 = vld [vmem:[#allocation5 + $0x6c] ss:$16 sps:$4 sm:$0xff]   ;;  %v1555_v19 = vld [vmem:[#allocation5 + $0x60] ss:$16 sps:$4 sm:$0xff]  }
  0x5e   : > { %483 = vmatpush1.bf16.msra.mxu0 %v1537_v7  ;;  %556 = vmatpush1.bf16.msra.mxu1 %v1538_v8  ;;  %v1556_v20 = vld [vmem:[#allocation5 + $0x68] ss:$16 sps:$4 sm:$0xff]   ;;  %v1557_v21 = vld [vmem:[#allocation5 + $0x44] ss:$16 sps:$4 sm:$0xff]   ;;  %v1559_v22 = vld [vmem:[#allocation5 + $0x4c] ss:$16 sps:$4 sm:$0xff]  }
  0x5f   : > { %484 = vmatprep.subr.bf16.mxu0 %v1539_v9  ;;  %557 = vmatprep.subr.bf16.mxu1 %v1541_v10  ;;  %v1561_v23 = vld [vmem:[#allocation5 + $0x40] ss:$16 sps:$4 sm:$0xff]   ;;  %v1562_v24 = vld [vmem:[#allocation5 + $0x48] ss:$16 sps:$4 sm:$0xff]   ;;  %v1563_v25 = vld [vmem:[#allocation5 + $0x24] ss:$16 sps:$4 sm:$0xff]  }
  0x60   : > { %v1565_v26 = vld [vmem:[#allocation5 + $0x2c] ss:$16 sps:$4 sm:$0xff]   ;;  %v1567_v27 = vld [vmem:[#allocation5 + $0x20] ss:$16 sps:$4 sm:$0xff]   ;;  %v1568_v28 = vld [vmem:[#allocation5 + $0x28] ss:$16 sps:$4 sm:$0xff]  }
  0x61   : > { %v1569_v29 = vld [vmem:[#allocation5 + $0x4] ss:$16 sps:$4 sm:$0xff]   ;;  %v1571_v30 = vld [vmem:[#allocation5 + $0xc] ss:$16 sps:$4 sm:$0xff]   ;;  %v1573_v31 = vld [vmem:[#allocation5] ss:$16 sps:$4 sm:$0xff]  }
  0x62   : > { %485 = vmatpush1.bf16.msra.mxu0 %v1543_v11  ;;  %558 = vmatpush1.bf16.msra.mxu1 %v1544_v12  ;;  %v1574_v32 = vld [vmem:[#allocation5 + $0x8] ss:$16 sps:$4 sm:$0xff]   ;;  %v1950_v33 = vld [vmem:[%s1937_s6] sm:$0xff]  ;;  %v1579_v40 = vld [vmem:[#allocation7 + $0x70] sm:$0xff]   ;;  %s1370_s14 = sshll.u32 %s1825_s22, 10  ;;  %s1189_s29 = sshll.u32 %s272_s13, 4  ;;  %s2009_s29 = int_to_ptr.vmem [resolvable:$true] %s1189_s29 }
  0x63   : > { %486 = vmatprep.subr.bf16.mxu0 %v1545_v13  ;;  %559 = vmatprep.subr.bf16.mxu1 %v1547_v14  ;;  %v1953_v34 = vld [vmem:[%s1937_s6 + $0x8] sm:$0xff]  ;;  %v1575_v35 = vld [vmem:[#allocation7 + $0x78] sm:$0xff]   ;;  %v1958_v41 = vld [vmem:[%s1937_s6 + $0x10] sm:$0xff]  ;;  %s2007_s11 = scalar_lea.hbm %s2057_s5, %s1370_s14  ;;  %s1175_s22 = scalar_lea.sflag [#allocation4], %s1931_s23 }
  0x64   : > { %v1576_v36 = vld [vmem:[#allocation7 + $0xf8] sm:$0xff]   ;;  %v284_v37 = vpack.c.bf16 %v1953_v34, %v1950_v33  ;;  %v1580_v43 = vld [vmem:[#allocation7 + $0xf0] sm:$0xff]   ;;  %v1583_v46 = vld [vmem:[#allocation7 + $0x68] sm:$0xff]   ;;  %s1691_s15 = scalar_lea.vmem %s2009_s29, 1024  ;;  %p2073_p10 = scmp.ne.s32.totalorder %s2067_s30, 0 }
  0x65   : > { %v1577_v38 = vld [vmem:[#allocation7 + $0x38] sm:$0xff]   ;;  %v1581_v44 = vld [vmem:[#allocation7 + $0x30] sm:$0xff]   ;;  %v1584_v47 = vld [vmem:[#allocation7 + $0xe8] sm:$0xff]   ;;  %p1692_p11 = scmp.ne.s32.totalorder %s2009_s29, %s1691_s15  ;;  %s1771_s16 = smov [#allocation8]  }
  0x66   : > { %487 = vmatpush1.bf16.msra.mxu0 %v1549_v15  ;;  %560 = vmatpush1.bf16.msra.mxu1 %v1550_v16  ;;  %v1578_v39 = vld [vmem:[#allocation7 + $0xb8] sm:$0xff]   ;;  %v1582_v45 = vld [vmem:[#allocation7 + $0xb0] sm:$0xff]   ;;  %v1585_v49 = vld [vmem:[#allocation7 + $0x28] sm:$0xff]   ;;  %s1695_s27 = sshll.u32 %s1771_s16, 4  ;;  %s1696_s27 = int_to_ptr.vmem [resolvable:$false] %s1695_s27 }
  0x67   : > { %488 = vmatprep.subr.bf16.mxu0 %v1551_v17  ;;  %561 = vmatprep.subr.bf16.mxu1 %v1553_v18  ;;  %v1961_v42 = vld [vmem:[%s1937_s6 + $0x18] sm:$0xff]  ;;  %v1586_v50 = vld [vmem:[#allocation7 + $0xa8] sm:$0xff]   ;;  %v1587_v51 = vld [vmem:[#allocation7 + $0x60] sm:$0xff]   ;;  %p1693_p1 = pnand %p1692_p11, %p2073_p10  ;;  %s1697_s7 = scalar_lea.vmem %s1696_s27, 2048 }
  0x68   : > { %v285_v48 = vpack.c.bf16 %v1961_v42, %v1958_v41  ;;  %v1968_v52 = vld [vmem:[%s1937_s6 + $0x20] sm:$0xff]  ;;  %v1971_v53 = vld [vmem:[%s1937_s6 + $0x28] sm:$0xff]  ;;  %v1591_v57 = vld [vmem:[#allocation7 + $0x58] sm:$0xff]   ;;  %p1698_p6 = scmp.lt.s32.totalorder %s2009_s29, %s1696_s27  ;;  %p1699_p12 = scmp.lt.s32.totalorder %s1697_s7, %s1691_s15 }
  0x69   : > { %v1588_v54 = vld [vmem:[#allocation7 + $0xe0] sm:$0xff]   ;;  %v1592_v58 = vld [vmem:[#allocation7 + $0xd8] sm:$0xff]   ;;  %v286_v59 = vpack.c.bf16 %v1971_v53, %v1968_v52  ;;  %v1595_v62 = vld [vmem:[#allocation7 + $0x50] sm:$0xff]   ;;  %p1694_p2 = pneg %p1693_p1 }
  0x6a   : > { %489 = vmatpush1.bf16.msra.mxu0 %v1555_v19  ;;  %562 = vmatpush1.bf16.msra.mxu1 %v1556_v20  ;;  %v1589_v55 = vld [vmem:[#allocation7 + $0x20] sm:$0xff]   ;;  %v1593_v60 = vld [vmem:[#allocation7 + $0x18] sm:$0xff]   ;;  %v1596_v63 = vld [vmem:[#allocation7 + $0xd0] sm:$0xff]   ;;  %p1700_p3 = por %p1699_p12, %p1698_p6 }
  0x6b   : > { %490 = vmatprep.subr.bf16.mxu0 %v1557_v21  ;;  %563 = vmatprep.subr.bf16.mxu1 %v1559_v22  ;;  %v1590_v56 = vld [vmem:[#allocation7 + $0xa0] sm:$0xff]   ;;  %v1594_v61 = vld [vmem:[#allocation7 + $0x98] sm:$0xff]   ;;  %v1978_v1 = vld [vmem:[%s1937_s6 + $0x30] sm:$0xff] }
  0x6c   : > { %v1983_v2 = vld [vmem:[%s1937_s6 + $0x38] sm:$0xff]  ;;  %v1597_v4 = vld [vmem:[#allocation7 + $0x10] sm:$0xff]   ;;  %v1599_v6 = vld [vmem:[#allocation7 + $0x48] sm:$0xff]   ;;  %p1701_p9 = pnand %p1700_p3, %p1694_p2 }
  0x6d   : > { %v287_v3 = vpack.c.bf16 %v1983_v2, %v1978_v1  ;;  %v1598_v5 = vld [vmem:[#allocation7 + $0x90] sm:$0xff]   ;;  %v1600_v7 = vld [vmem:[#allocation7 + $0xc8] sm:$0xff]   ;;  %v1604_v10 = vld [vmem:[#allocation7 + $0xc0] sm:$0xff]  }
  0x6e   : > { %491 = vmatpush1.bf16.msra.mxu0 %v1561_v23  ;;  %564 = vmatpush1.bf16.msra.mxu1 %v1562_v24  ;;  %v1601_v8 = vld [vmem:[#allocation7 + $0x8] sm:$0xff]   ;;  %v1605_v11 = vld [vmem:[#allocation7] sm:$0xff]  }
  0x6f   : > { %492 = vmatprep.subr.bf16.mxu0 %v1563_v25  ;;  %565 = vmatprep.subr.bf16.mxu1 %v1565_v26  ;;  %v1602_v9 = vld [vmem:[#allocation7 + $0x88] sm:$0xff]   ;;  %v1606_v12 = vld [vmem:[#allocation7 + $0x80] sm:$0xff]  }
  0x72   : > { %493 = vmatpush1.bf16.msra.mxu0 %v1567_v27  ;;  %566 = vmatpush1.bf16.msra.mxu1 %v1568_v28 }
  0x73   : > { %494 = vmatprep.subr.bf16.mxu0 %v1569_v29  ;;  %567 = vmatprep.subr.bf16.mxu1 %v1571_v30 }
  0x76   : > { %495 = vmatpush1.bf16.msra.mxu0 %v1573_v31  ;;  %568 = vmatpush1.bf16.msra.mxu1 %v1574_v32 }
  0x77   : > { %1371 = vmatprep.subr.bf16.mxu0 %v1575_v35  ;;  %1411 = vmatprep.subr.bf16.mxu1 %v1576_v36 }
  0x79   : > { %513 = vmatmul.mubr.bf16.vlgmr.msra.gmra.mxu0 %v284_v37  ;;  %586 = vmatmul.mubr.bf16.vlgmr.msra.gmra.mxu1 %v284_v37 }
  0x7a   : > { %522 = vmatprep.mubr.bf16.mxu0 %v1770_v0  ;;  %595 = vmatprep.mubr.bf16.mxu1 %v1770_v0 }
  0x7b   : > { %1372 = vmatpush3.bf16.msra.mxu0 %v1577_v38  ;;  %1412 = vmatpush3.bf16.msra.mxu1 %v1578_v39 }
  0x7c   : > { %1373 = vmatprep.subr.bf16.mxu0 %v1579_v40  ;;  %1413 = vmatprep.subr.bf16.mxu1 %v1580_v43 }
  0x7f   : > { %1374 = vmatpush3.bf16.msra.mxu0 %v1581_v44  ;;  %1414 = vmatpush3.bf16.msra.mxu1 %v1582_v45 }
  0x80   : > { %1375 = vmatprep.subr.bf16.mxu0 %v1583_v46  ;;  %1415 = vmatprep.subr.bf16.mxu1 %v1584_v47 }
  0x81   : > { %523 = vmatmul.mubr.bf16.gmra.mxu0 %v285_v48  ;;  %596 = vmatmul.mubr.bf16.gmra.mxu1 %v285_v48 }
  0x82   : > { %532 = vmatprep.mubr.bf16.mxu0 %v1770_v0  ;;  %605 = vmatprep.mubr.bf16.mxu1 %v1770_v0 }
  0x83   : > { %1376 = vmatpush3.bf16.msra.mxu0 %v1585_v49  ;;  %1416 = vmatpush3.bf16.msra.mxu1 %v1586_v50 }
  0x84   : > { %1377 = vmatprep.subr.bf16.mxu0 %v1587_v51  ;;  %1417 = vmatprep.subr.bf16.mxu1 %v1588_v54 }
  0x87   : > { %1378 = vmatpush3.bf16.msra.mxu0 %v1589_v55  ;;  %1418 = vmatpush3.bf16.msra.mxu1 %v1590_v56 }
  0x88   : > { %1379 = vmatprep.subr.bf16.mxu0 %v1591_v57  ;;  %1419 = vmatprep.subr.bf16.mxu1 %v1592_v58 }
  0x89   : > { %533 = vmatmul.mubr.bf16.gmra.mxu0 %v286_v59  ;;  %606 = vmatmul.mubr.bf16.gmra.mxu1 %v286_v59 }
  0x8a   : > { %542 = vmatprep.mubr.bf16.mxu0 %v1770_v0  ;;  %615 = vmatprep.mubr.bf16.mxu1 %v1770_v0  ;;  %v1603_v0 = vld [vmem:[#allocation7 + $0x40] sm:$0xff]  }
  0x8b   : > { %1380 = vmatpush3.bf16.msra.mxu0 %v1593_v60  ;;  %1420 = vmatpush3.bf16.msra.mxu1 %v1594_v61 }
  0x8c   : > { %1381 = vmatprep.subr.bf16.mxu0 %v1595_v62  ;;  %1421 = vmatprep.subr.bf16.mxu1 %v1596_v63 }
  0x8f   : > { %1382 = vmatpush3.bf16.msra.mxu0 %v1597_v4  ;;  %1422 = vmatpush3.bf16.msra.mxu1 %v1598_v5 }
  0x90   : > { %1383 = vmatprep.subr.bf16.mxu0 %v1599_v6  ;;  %1423 = vmatprep.subr.bf16.mxu1 %v1600_v7 }
  0x91   : > { %543 = vmatmul.mubr.bf16.gmra.mxu0 %v287_v3  ;;  %616 = vmatmul.mubr.bf16.gmra.mxu1 %v287_v3 }
  0x93   : > { %1384 = vmatpush3.bf16.msra.mxu0 %v1601_v8  ;;  %1424 = vmatpush3.bf16.msra.mxu1 %v1602_v9 }
  0x94   : > { %1385 = vmatprep.subr.bf16.mxu0 %v1603_v0  ;;  %1425 = vmatprep.subr.bf16.mxu1 %v1604_v10 }
  0x97   : > { %1386 = vmatpush3.bf16.msra.mxu0 %v1605_v11  ;;  %1426 = vmatpush3.bf16.msra.mxu1 %v1606_v12 }
 0x139   : > { %v514_v13 = vpop.f32.mrf.mxu0  ;;  %v587_v14 = vpop.f32.mrf.mxu1 }
 0x13a   : > { %v626_v27 = vmax.f32 %v514_v13, 0.0  ;;  %v628_v28 = vmax.f32 %v587_v14, 0.0 }
 0x13b   : > { %v516_v15 = vpop.f32.mrf.mxu0  ;;  %v589_v16 = vpop.f32.mrf.mxu1 }
 0x13c   : > { %v627_v23 = vmax.f32 %v516_v15, 0.0  ;;  %v629_v24 = vmax.f32 %v589_v16, 0.0 }
 0x13d   : > { %v518_v17 = vpop.f32.mrf.mxu0  ;;  %v591_v18 = vpop.f32.mrf.mxu1 }
 0x13e   : > { %v630_v19 = vmax.f32 %v518_v17, 0.0  ;;  %v632_v20 = vmax.f32 %v591_v18, 0.0 }
 0x13f   : > { %v520_v21 = vpop.f32.mrf.mxu0  ;;  %v593_v22 = vpop.f32.mrf.mxu1 }
 0x140   : > { %v631_v25 = vmax.f32 %v520_v21, 0.0  ;;  %v633_v26 = vmax.f32 %v593_v22, 0.0  ;;  %v658_v35 = vpack.c.bf16 %v630_v19, %v626_v27  ;;  %v660_v36 = vpack.c.bf16 %v632_v20, %v628_v28 }
 0x141   : > { %v524_v29 = vpop.f32.mrf.mxu0  ;;  %v597_v30 = vpop.f32.mrf.mxu1 }
 0x142   : > { %v659_v31 = vpack.c.bf16 %v631_v25, %v627_v23  ;;  %v661_v32 = vpack.c.bf16 %v633_v26, %v629_v24  ;;  %v634_v51 = vmax.f32 %v524_v29, 0.0  ;;  %v636_v54 = vmax.f32 %v597_v30, 0.0 }
 0x143   : > { %v526_v37 = vpop.f32.mrf.mxu0  ;;  %v599_v38 = vpop.f32.mrf.mxu1 }
 0x144   : > { %962 = vmatprep.mubr.bf16.mxu0 %v659_v31  ;;  %1027 = vmatprep.mubr.bf16.mxu1 %v661_v32  ;;  %v635_v47 = vmax.f32 %v526_v37, 0.0  ;;  %v637_v48 = vmax.f32 %v599_v38, 0.0 }
 0x145   : > { %v528_v39 = vpop.f32.mrf.mxu0  ;;  %v601_v40 = vpop.f32.mrf.mxu1  ;;  %963 = vmatmul.mubr.bf16.vlgmr.msra.gmra.mxu0 %v658_v35  ;;  %1028 = vmatmul.mubr.bf16.vlgmr.msra.gmra.mxu1 %v660_v36 }
 0x146   : > { %v638_v43 = vmax.f32 %v528_v39, 0.0  ;;  %v640_v44 = vmax.f32 %v601_v40, 0.0 }
 0x147   : > { %v530_v45 = vpop.f32.mrf.mxu0  ;;  %v603_v46 = vpop.f32.mrf.mxu1 }
 0x148   : > { %v639_v49 = vmax.f32 %v530_v45, 0.0  ;;  %v641_v50 = vmax.f32 %v603_v46, 0.0  ;;  %v662_v59 = vpack.c.bf16 %v638_v43, %v634_v51  ;;  %v664_v60 = vpack.c.bf16 %v640_v44, %v636_v54 }
 0x149   : > { %v534_v55 = vpop.f32.mrf.mxu0  ;;  %v607_v56 = vpop.f32.mrf.mxu1 }
 0x14a   : > { %v663_v57 = vpack.c.bf16 %v639_v49, %v635_v47  ;;  %v665_v58 = vpack.c.bf16 %v641_v50, %v637_v48  ;;  %v642_v11 = vmax.f32 %v534_v55, 0.0  ;;  %v644_v12 = vmax.f32 %v607_v56, 0.0 }
 0x14b   : > { %v536_v61 = vpop.f32.mrf.mxu0  ;;  %v609_v62 = vpop.f32.mrf.mxu1 }
 0x14c   : > { %970 = vmatprep.mubr.bf16.mxu0 %v663_v57  ;;  %1035 = vmatprep.mubr.bf16.mxu1 %v665_v58  ;;  %v643_v8 = vmax.f32 %v536_v61, 0.0  ;;  %v645_v9 = vmax.f32 %v609_v62, 0.0 }
 0x14d   : > { %v538_v63 = vpop.f32.mrf.mxu0  ;;  %v611_v3 = vpop.f32.mrf.mxu1  ;;  %971 = vmatmul.mubr.bf16.gmra.mxu0 %v662_v59  ;;  %1036 = vmatmul.mubr.bf16.gmra.mxu1 %v664_v60 }
 0x14e   : > { %v646_v4 = vmax.f32 %v538_v63, 0.0  ;;  %v648_v5 = vmax.f32 %v611_v3, 0.0 }
 0x14f   : > { %v540_v6 = vpop.f32.mrf.mxu0  ;;  %v613_v7 = vpop.f32.mrf.mxu1 }
 0x150   : > { %v647_v0 = vmax.f32 %v540_v6, 0.0  ;;  %v649_v10 = vmax.f32 %v613_v7, 0.0  ;;  %v666_v17 = vpack.c.bf16 %v646_v4, %v642_v11  ;;  %v668_v18 = vpack.c.bf16 %v648_v5, %v644_v12 }
 0x151   : > { %v544_v13 = vpop.f32.mrf.mxu0  ;;  %v617_v14 = vpop.f32.mrf.mxu1 }
 0x152   : > { %v667_v15 = vpack.c.bf16 %v647_v0, %v643_v8  ;;  %v669_v16 = vpack.c.bf16 %v649_v10, %v645_v9  ;;  %v650_v31 = vmax.f32 %v544_v13, 0.0  ;;  %v652_v32 = vmax.f32 %v617_v14, 0.0 }
 0x153   : > { %v546_v19 = vpop.f32.mrf.mxu0  ;;  %v619_v20 = vpop.f32.mrf.mxu1 }
 0x154   : > { %978 = vmatprep.mubr.bf16.mxu0 %v667_v15  ;;  %1043 = vmatprep.mubr.bf16.mxu1 %v669_v16  ;;  %v651_v27 = vmax.f32 %v546_v19, 0.0  ;;  %v653_v28 = vmax.f32 %v619_v20, 0.0 }
 0x155   : > { %v548_v21 = vpop.f32.mrf.mxu0  ;;  %v621_v22 = vpop.f32.mrf.mxu1  ;;  %979 = vmatmul.mubr.bf16.gmra.mxu0 %v666_v17  ;;  %1044 = vmatmul.mubr.bf16.gmra.mxu1 %v668_v18 }
 0x156   : > { %v654_v23 = vmax.f32 %v548_v21, 0.0  ;;  %v656_v24 = vmax.f32 %v621_v22, 0.0 }
 0x157   : > { %v550_v25 = vpop.f32.mrf.mxu0  ;;  %v623_v26 = vpop.f32.mrf.mxu1 }
 0x158   : > { %v655_v29 = vmax.f32 %v550_v25, 0.0  ;;  %v657_v30 = vmax.f32 %v623_v26, 0.0  ;;  %v670_v37 = vpack.c.bf16 %v654_v23, %v650_v31  ;;  %v672_v38 = vpack.c.bf16 %v656_v24, %v652_v32 }
 0x15a   : > { %v671_v35 = vpack.c.bf16 %v655_v29, %v651_v27  ;;  %v673_v36 = vpack.c.bf16 %v657_v30, %v653_v28 }
 0x15c   : > { %986 = vmatprep.mubr.bf16.mxu0 %v671_v35  ;;  %1051 = vmatprep.mubr.bf16.mxu1 %v673_v36 }
 0x15d   : > { %987 = vmatmul.mubr.bf16.gmra.mxu0 %v670_v37  ;;  %1052 = vmatmul.mubr.bf16.gmra.mxu1 %v672_v38 }
 0x205   : > { %v1387_v39 = vpop.f32.mrf.mxu0  ;;  %v1427_v40 = vpop.f32.mrf.mxu1 }
 0x207   : > { %v1388_v43 = vpop.f32.mrf.mxu0  ;;  %v1428_v44 = vpop.f32.mrf.mxu1 }
 0x208   : > { %v1389_v49 = vadd.f32 %v1388_v43, %v1387_v39  ;;  %v1429_v50 = vadd.f32 %v1428_v44, %v1427_v40 }
 0x209   : > { %v1390_v45 = vpop.f32.mrf.mxu0  ;;  %v1430_v46 = vpop.f32.mrf.mxu1 }
 0x20a   : > { %v1030_v60 = vadd.f32 %v1429_v50, %v1389_v49 }
 0x20b   : > { %v1391_v47 = vpop.f32.mrf.mxu0  ;;  %v1431_v48 = vpop.f32.mrf.mxu1 }
 0x20c   : > { %v1392_v51 = vadd.f32 %v1391_v47, %v1390_v45  ;;  %v1432_v54 = vadd.f32 %v1431_v48, %v1430_v46  ;;  %v1060_v8 = vadd.f32 %v1030_v60, %v1950_v33 }
 0x20d   : > { %v1393_v55 = vpop.f32.mrf.mxu0  ;;  %v1433_v56 = vpop.f32.mrf.mxu1 }
 0x20e   : > { %v1033_v57 = vadd.f32 %v1432_v54, %v1392_v51 }
 0x20f   : > { %v1394_v58 = vpop.f32.mrf.mxu0  ;;  %v1434_v59 = vpop.f32.mrf.mxu1 }
 0x210   : > { %v1395_v61 = vadd.f32 %v1394_v58, %v1393_v55  ;;  %v1435_v62 = vadd.f32 %v1434_v59, %v1433_v56  ;;  %v1061_v4 = vadd.f32 %v1033_v57, %v1953_v34 }
 0x211   : > { %v1396_v63 = vpop.f32.mrf.mxu0  ;;  %v1436_v3 = vpop.f32.mrf.mxu1 }
 0x212   : > { %v1038_v5 = vadd.f32 %v1435_v62, %v1395_v61  ;;  %v1068_v13 = vadd.f32 %v1061_v4, %v1060_v8 }
 0x213   : > { %v1397_v6 = vpop.f32.mrf.mxu0  ;;  %v1437_v7 = vpop.f32.mrf.mxu1 }
 0x214   : > { %v1062_v9 = vadd.f32 %v1038_v5, %v1958_v41  ;;  %v1398_v0 = vadd.f32 %v1397_v6, %v1396_v63  ;;  %v1438_v10 = vadd.f32 %v1437_v7, %v1436_v3 }
 0x215   : > { %v1399_v11 = vpop.f32.mrf.mxu0  ;;  %v1439_v12 = vpop.f32.mrf.mxu1 }
 0x216   : > { %v1041_v14 = vadd.f32 %v1438_v10, %v1398_v0  ;;  %v1069_v17 = vadd.f32 %v1068_v13, %v1062_v9 }
 0x217   : > { %v1400_v15 = vpop.f32.mrf.mxu0  ;;  %v1440_v16 = vpop.f32.mrf.mxu1 }
 0x218   : > { %v1063_v18 = vadd.f32 %v1041_v14, %v1961_v42  ;;  %v1401_v41 = vadd.f32 %v1400_v15, %v1399_v11  ;;  %v1441_v25 = vadd.f32 %v1440_v16, %v1439_v12 }
 0x219   : > { %v1402_v19 = vpop.f32.mrf.mxu0  ;;  %v1442_v34 = vpop.f32.mrf.mxu1 }
 0x21a   : > { %v1070_v20 = vadd.f32 %v1069_v17, %v1063_v18  ;;  %v1046_v42 = vadd.f32 %v1441_v25, %v1401_v41 }
 0x21b   : > { %v1403_v21 = vpop.f32.mrf.mxu0  ;;  %v1443_v22 = vpop.f32.mrf.mxu1 }
 0x21c   : > { %v1071_v23 = vrot.slane %v1070_v20, 4  ;;  %v1404_v33 = vadd.f32 %v1403_v21, %v1402_v19  ;;  %v1444_v24 = vadd.f32 %v1443_v22, %v1442_v34  ;;  %v1064_v49 = vadd.f32 %v1046_v42, %v1968_v52  ;;  %v1359_v42 = vld [vmem:[%s2055_s3] ss:$0 sm:$0xff] }
 0x21d   : > { %v1405_v26 = vpop.f32.mrf.mxu0  ;;  %v1445_v27 = vpop.f32.mrf.mxu1 }
 0x21e   : > { %v1072_v28 = vadd.f32 %v1071_v23, %v1070_v20  ;;  %v1049_v29 = vadd.f32 %v1444_v24, %v1404_v33 }
 0x21f   : > { %v1406_v30 = vpop.f32.mrf.mxu0  ;;  %v1446_v31 = vpop.f32.mrf.mxu1 }
 0x220   : > { %v1073_v32 = vrot.slane %v1072_v28, 2  ;;  %v1407_v35 = vadd.f32 %v1406_v30, %v1405_v26  ;;  %v1447_v36 = vadd.f32 %v1446_v31, %v1445_v27  ;;  %v1065_v43 = vadd.f32 %v1049_v29, %v1971_v53 }
 0x221   : > { %v1408_v37 = vpop.f32.mrf.mxu0  ;;  %v1448_v38 = vpop.f32.mrf.mxu1 }
 0x222   : > { %v1074_v39 = vadd.f32 %v1073_v32, %v1072_v28  ;;  %v1054_v40 = vadd.f32 %v1447_v36, %v1407_v35  ;;  %v1077_v55 = vadd.f32 %v1065_v43, %v1064_v49 }
 0x223   : > { %v1409_v44 = vpop.f32.mrf.mxu0  ;;  %v1449_v45 = vpop.f32.mrf.mxu1 }
 0x224   : > { %v1075_v46 = vrot.slane %v1074_v39, 1  ;;  %v1410_v47 = vadd.f32 %v1409_v44, %v1408_v37  ;;  %v1450_v48 = vadd.f32 %v1449_v45, %v1448_v38  ;;  %v1066_v50 = vadd.f32 %v1054_v40, %v1978_v1  ;;  %v1360_v44 = vld [vmem:[%s2056_s4] ss:$0 sm:$0xff] }
 0x226   : > { %v1076_v51 = vadd.f32 %v1075_v46, %v1074_v39  ;;  %v1057_v54 = vadd.f32 %v1450_v48, %v1410_v47  ;;  %v1078_v58 = vadd.f32 %v1077_v55, %v1066_v50 }
 0x228   : > { %v1086_v56 = vmul.f32 0.03125, %v1076_v51  ;;  %v1067_v57 = vadd.f32 %v1057_v54, %v1983_v2 }
 0x22a   : > { %v1088_v59 = vsub.f32 %v1060_v8, %v1086_v56  ;;  %v1089_v60 = vsub.f32 %v1061_v4, %v1086_v56  ;;  %v1090_v61 = vsub.f32 %v1062_v9, %v1086_v56  ;;  %v1079_v53 = vadd.f32 %v1078_v58, %v1067_v57 }
 0x22b   : > { %v1091_v62 = vsub.f32 %v1063_v18, %v1086_v56 }
 0x22c   : > { %v1096_v63 = vmul.f32 %v1088_v59, %v1088_v59  ;;  %v1097_v3 = vmul.f32 %v1089_v60, %v1089_v60  ;;  %v1080_v5 = vrot.slane %v1079_v53, 4  ;;  %v1098_v6 = vmul.f32 %v1090_v61, %v1090_v61 }
 0x22d   : > { %v1099_v0 = vmul.f32 %v1091_v62, %v1091_v62 }
 0x22e   : > { %v1104_v7 = vadd.f32 %v1097_v3, %v1096_v63  ;;  %v1081_v52 = vadd.f32 %v1080_v5, %v1079_v53 }
 0x230   : > { %v1105_v1 = vadd.f32 %v1104_v7, %v1098_v6  ;;  %v1082_v10 = vrot.slane %v1081_v52, 2 }
 0x232   : > { %v1106_v11 = vadd.f32 %v1105_v1, %v1099_v0  ;;  %v1083_v12 = vadd.f32 %v1082_v10, %v1081_v52 }
 0x234   : > { %v1107_v13 = vrot.slane %v1106_v11, 4  ;;  %v1084_v14 = vrot.slane %v1083_v12, 1 }
 0x236   : > { %v1108_v2 = vadd.f32 %v1107_v13, %v1106_v11  ;;  %v1085_v15 = vadd.f32 %v1084_v14, %v1083_v12 }
 0x238   : > { %v1109_v8 = vrot.slane %v1108_v2, 2  ;;  %v1087_v4 = vmul.f32 0.03125, %v1085_v15 }
 0x23a   : > { %v1110_v9 = vadd.f32 %v1109_v8, %v1108_v2  ;;  %v1092_v16 = vsub.f32 %v1064_v49, %v1087_v4  ;;  %v1093_v17 = vsub.f32 %v1065_v43, %v1087_v4  ;;  %v1094_v18 = vsub.f32 %v1066_v50, %v1087_v4 }
 0x23b   : > { %v1095_v34 = vsub.f32 %v1067_v57, %v1087_v4 }
 0x23c   : > { %v1111_v19 = vrot.slane %v1110_v9, 1  ;;  %v1100_v20 = vmul.f32 %v1092_v16, %v1092_v16  ;;  %v1101_v21 = vmul.f32 %v1093_v17, %v1093_v17  ;;  %v1102_v23 = vmul.f32 %v1094_v18, %v1094_v18 }
 0x23d   : > { %v1103_v41 = vmul.f32 %v1095_v34, %v1095_v34 }
 0x23e   : > { %v1112_v22 = vadd.f32 %v1111_v19, %v1110_v9  ;;  %v1113_v33 = vadd.f32 %v1101_v21, %v1100_v20 }
 0x240   : > { %v1122_v24 = vmul.f32 0.03125, %v1112_v22  ;;  %v1114_v25 = vadd.f32 %v1113_v33, %v1102_v23 }
 0x242   : > { %v1124_v26 = vadd.f32 1e-05, %v1122_v24  ;;  %v1115_v27 = vadd.f32 %v1114_v25, %v1103_v41 }
 0x244   : > { %1607 = vrsqrt.f32 %v1124_v26  ;;  %v1116_v28 = vrot.slane %v1115_v27, 4 }
 0x246   : > { %v1117_v29 = vadd.f32 %v1116_v28, %v1115_v27 }
 0x248   : > { %v1118_v30 = vrot.slane %v1117_v29, 2 }
 0x24a   : > { %v1119_v31 = vadd.f32 %v1118_v30, %v1117_v29 }
 0x24c   : > { %v1120_v32 = vrot.slane %v1119_v31, 1 }
 0x24e   : > { %v1121_v35 = vadd.f32 %v1120_v32, %v1119_v31 }
 0x250   : > { %v1123_v37 = vmul.f32 0.03125, %v1121_v35 }
 0x251   : > { %v1608_v36 = vpop.eup %1607 }
 0x252   : > { %v1130_v38 = vmul.f32 %v1608_v36, %v1088_v59  ;;  %v1131_v39 = vmul.f32 %v1608_v36, %v1089_v60  ;;  %v1132_v40 = vmul.f32 %v1608_v36, %v1090_v61  ;;  %v1133_v43 = vmul.f32 %v1608_v36, %v1091_v62 }
 0x253   : > { %v1125_v45 = vadd.f32 1e-05, %v1123_v37 }
 0x254   : > { %v1144_v46 = vmul.f32 %v1359_v42, %v1130_v38  ;;  %v1145_v47 = vmul.f32 %v1359_v42, %v1131_v39  ;;  %v1146_v48 = vmul.f32 %v1359_v42, %v1132_v40  ;;  %v1147_v49 = vmul.f32 %v1359_v42, %v1133_v43 }
 0x255   : > { %1609 = vrsqrt.f32 %v1125_v45 }
 0x256   : > { %v1158_v50 = vadd.f32 %v1360_v44, %v1144_v46  ;;  %v1159_v51 = vadd.f32 %v1360_v44, %v1145_v47  ;;  %v1160_v54 = vadd.f32 %v1360_v44, %v1146_v48  ;;  %v1161_v55 = vadd.f32 %v1360_v44, %v1147_v49 }
 0x258   : > { %1166 = vst [vmem:[%s272_s13] sm:$0xff] %v1158_v50  ;;  %1167 = vst [vmem:[%s272_s13 + $0x8] sm:$0xff] %v1159_v51 }
 0x259   : > { %1168 = vst [vmem:[%s272_s13 + $0x10] sm:$0xff] %v1160_v54  ;;  %1169 = vst [vmem:[%s272_s13 + $0x18] sm:$0xff] %v1161_v55 }
 0x262   : > { %v1610_v56 = vpop.eup %1609 }
 0x263   : > { %v1134_v57 = vmul.f32 %v1610_v56, %v1092_v16  ;;  %v1135_v58 = vmul.f32 %v1610_v56, %v1093_v17  ;;  %v1136_v59 = vmul.f32 %v1610_v56, %v1094_v18  ;;  %v1137_v60 = vmul.f32 %v1610_v56, %v1095_v34 }
 0x265   : > { %v1148_v61 = vmul.f32 %v1359_v42, %v1134_v57  ;;  %v1149_v53 = vmul.f32 %v1359_v42, %v1135_v58  ;;  %v1150_v62 = vmul.f32 %v1359_v42, %v1136_v59  ;;  %v1151_v63 = vmul.f32 %v1359_v42, %v1137_v60 }
 0x267   : > { %v1162_v3 = vadd.f32 %v1360_v44, %v1148_v61  ;;  %v1163_v5 = vadd.f32 %v1360_v44, %v1149_v53  ;;  %v1164_v6 = vadd.f32 %v1360_v44, %v1150_v62  ;;  %v1165_v7 = vadd.f32 %v1360_v44, %v1151_v63 }
 0x269   : > { %1170 = vst [vmem:[%s272_s13 + $0x20] sm:$0xff] %v1162_v3  ;;  %1171 = vst [vmem:[%s272_s13 + $0x28] sm:$0xff] %v1163_v5 }
 0x26a   : > { %1172 = vst [vmem:[%s272_s13 + $0x30] sm:$0xff] %v1164_v6  ;;  %1173 = vst [vmem:[%s272_s13 + $0x38] sm:$0xff] %v1165_v7 }
 0x26b   : > { %1704 = shalt.err (!%p1701_p9)
}
 0x26c   : > { %s1705_s6 = scalar_lea.hbm %s2007_s11, 1024  ;;  %s1709_s10 = scalar_lea.hbm %s2057_s5, 2048 }
 0x26d   : > { %p1706_p13 = scmp.ne.s32.totalorder %s2007_s11, %s1705_s6  ;;  %p1710_p4 = scmp.lt.s32.totalorder %s2007_s11, %s2057_s5 }
 0x26e   : > { %p1711_p8 = scmp.lt.s32.totalorder %s1709_s10, %s1705_s6 }
 0x26f   : > { %p1707_p5 = pnand %p1706_p13, %p2073_p10 }
 0x270   : > { %p1712_p7 = por %p1711_p8, %p1710_p4 }
 0x271   : > { %p1708_p0 = pneg %p1707_p5 }
 0x273   : > { %p1713_p11 = pnand %p1712_p7, %p1708_p0 }
 0x275   : > { %1716 = shalt.err (!%p1713_p11)
}
 0x276   : > { %s1772_s14 = smov 128   ;;  %s1773_s8 = smov 8  }
 0x277   : > { %1461 = dma.vmem_to_hbm [thread:$0]  (%p2073_p10), %s2009_s29, 1024, %s2007_s11, %s1175_s22, %s1772_s14, %s1772_s14, %s1773_s8  }
 0x278 PF: > { %s1204_s9 = sand.u32 1, %s1747_s18   ;;  %p2074_p1 = scmp.ne.s32.totalorder %s2063_s25, 0 }
 0x279   : > { %p2075_p2 = scmp.ge.s32.totalorder %s1759_s21, 2  ;;  %s1205_s15 = scalar_lea.sflag [#allocation4], %s1204_s9 }
 0x27b   : > { %p1475_p6 = pnand %p2075_p2, %p2074_p1 }
 0x27d   : > { %p1476_p12 = pneg %p1475_p6 }
 0x27f   : > { %1742 = dma.done.wait (%p1476_p12), %s1205_s15, 1024  }
 0x280   : > { %1744 = vsyncadd (%p1476_p12), %s1205_s15, 4294966272  ;;  %p19_p3 = scmp.ge.s32.totalorder %s1876_s17, 4   ;;  %s2076_s18 = smov %s1751_s19 }
 0x281   : > { %s2077_s19 = smov %s1755_s20  ;;  %s2078_s20 = smov %s1885_s28 }
 0x282   : > { %s2079_s21 = smov %s1876_s17  ;;  %21 = sbr.rel (!%p19_p3) target bundleno = 6 (0x6), region = 93 }
 0x287   :  { %1210 = vsyncpa [#allocation3], 1 }
 0x288   :  { %1212 = vsyncpa [#allocation3 + $0x1], 1 }
 0x289   :  { %1213 = vsyncpa [#allocation6], 1 }
 0x28a   :  { %1214 = vsyncpa [#allocation4], 1 }
 0x28b   :  { %1216 = vsyncpa [#allocation4 + $0x1], 1 }

</bundles_post_ra>
